<compile_context>
chip_gen: v7x
topology: tpu7x:2x2x1
jax: 0.10.0
libtpu: 0.0.40
codegen_flags: <defaults>
</compile_context>

<pallas_src>
import jax
import jax.numpy as jnp
from jax.experimental import pallas as pl
from jax.experimental.pallas import tpu as pltpu


# --------------------------------------------------------------------------
# small helpers (wrapper-side layout plumbing)
# --------------------------------------------------------------------------
def _round_up(x, m):
    return (x + m - 1) // m * m


def _pad_axis(a, axis, target):
    cur = a.shape[axis]
    if target <= cur:
        return a
    widths = [(0, 0)] * a.ndim
    widths[axis] = (0, target - cur)
    return jnp.pad(a, widths)


def _pad2(a, rows, cols):
    return jnp.pad(a, ((0, rows - a.shape[0]), (0, cols - a.shape[1])))


def _pad_gate_cols(w, H, H_pad):
    """Pad the last (4*H) axis gate-block-wise to 4*H_pad (gate order i,f,g,o)."""
    lead = w.shape[:-1]
    w4 = w.reshape(*lead, 4, H)
    w4 = _pad_axis(w4, -1, H_pad)
    return w4.reshape(*lead, 4 * H_pad)


def _sigmoid(x):
    # sigmoid via tanh identity: one EUP transcendental instead of exp+divide.
    return 0.5 * (jnp.tanh(0.5 * x) + 1.0)


# --------------------------------------------------------------------------
# Tiled matmul + bias kernel (vocab projection). bf16 operands, f32 accum.
# --------------------------------------------------------------------------
def _matmul_bias_kernel(x_ref, w_ref, b_ref, o_ref):
    o_ref[...] = (jnp.dot(x_ref[...], w_ref[...],
                          preferred_element_type=jnp.float32)
                  + b_ref[...]).astype(o_ref.dtype)


def matmul_bias(x, w, b):
    """x: (M, K), w: (K, N) (cast to bf16 inside), b: (N,) f32 -> (M, N) f32."""
    M, K = x.shape
    Kw, N = w.shape
    assert K == Kw
    # adaptive row tile: avoid doubling padded rows for awkward M
    if M < 128:
        tm = _round_up(M, 8)
    elif _round_up(M, 256) == _round_up(M, 128):
        tm = 256
    else:
        tm = 128
    tn = 512 if N >= 512 else _round_up(N, 128)
    Mp = _round_up(M, tm)
    Np = _round_up(N, tn)
    Kp = _round_up(K, 128)

    xp = _pad2(x, Mp, Kp).astype(jnp.bfloat16)
    wp = _pad2(w, Kp, Np).astype(jnp.bfloat16)
    bp = _pad_axis(b, 0, Np).reshape(1, Np).astype(jnp.float32)

    grid = (Mp // tm, Np // tn)
    cost = pl.CostEstimate(flops=2 * Mp * Kp * Np, transcendentals=0,
                           bytes_accessed=2 * (Mp * Kp + Kp * Np) + 4 * Mp * Np)

    out = pl.pallas_call(
        _matmul_bias_kernel,
        out_shape=jax.ShapeDtypeStruct((Mp, Np), jnp.float32),
        grid=grid,
        in_specs=[pl.BlockSpec((tm, Kp), lambda i, j: (i, 0)),
                  pl.BlockSpec((Kp, tn), lambda i, j: (0, j)),
                  pl.BlockSpec((1, tn), lambda i, j: (0, j))],
        out_specs=pl.BlockSpec((tm, tn), lambda i, j: (i, j)),
        compiler_params=pltpu.CompilerParams(
            dimension_semantics=("parallel", "parallel"),
            vmem_limit_bytes=32 * 1024 * 1024),
        cost_estimate=cost,
    )(xp, wp, bp)
    return out[:M, :N]


# --------------------------------------------------------------------------
# LSTM recurrence kernel with the input projection folded in.
#
# Layout: all activations are 2-D with rows ordered (t, b) -> row = t*Bp + b.
#   x      : (Tp*Bp, Ep)   f32  (pipelined, one chunk of timesteps per step)
#   W_ih   : (Ep, 4*Hp)    bf16 (memory_space=ANY, DMA'd once to VMEM)
#   W_hh   : (Hp, 4*Hp)    bf16 (memory_space=ANY, DMA'd once to VMEM)
#   bias   : (1, 4*Hp)     f32
#   out    : (Tp*Bp, Hp)   f32  (per-step hidden states)
# Gate order matches PyTorch: i, f, g, o.  h/c state lives in f32 VMEM scratch
# for the whole sequence; only the matmul operands are bf16.
# --------------------------------------------------------------------------
def _lstm_rec_kernel(x_ref, wih_hbm, whh_hbm, b_ref, h0_ref, c0_ref,
                     out_ref, wih_v, whh_v, gx_s, h_s, c_s, dma_sem):
    Bp, Hp = h_s.shape
    K = x_ref.shape[0] // Bp                 # timesteps in this chunk (static)

    @pl.when(pl.program_id(0) == 0)
    def _():
        # One-shot load of resident weights into single-buffered VMEM scratch.
        cp_ih = pltpu.make_async_copy(wih_hbm, wih_v, dma_sem.at[0])
        cp_hh = pltpu.make_async_copy(whh_hbm, whh_v, dma_sem.at[1])
        cp_ih.start()
        cp_hh.start()
        cp_ih.wait()
        cp_hh.wait()
        h_s[...] = h0_ref[...]
        c_s[...] = c0_ref[...]

    # Input projection for the whole chunk: (K*Bp, Ep) @ (Ep, 4Hp) on the MXU.
    gx_s[...] = (jnp.dot(x_ref[...].astype(jnp.bfloat16), wih_v[...],
                         preferred_element_type=jnp.float32)
                 + b_ref[...])

    def step(k, carry):
        r = pl.multiple_of(k * Bp, Bp)
        gates = gx_s[pl.ds(r, Bp), :] + jnp.dot(
            h_s[...].astype(jnp.bfloat16), whh_v[...],
            preferred_element_type=jnp.float32)
        i = _sigmoid(gates[:, 0 * Hp:1 * Hp])
        f = _sigmoid(gates[:, 1 * Hp:2 * Hp])
        g = jnp.tanh(gates[:, 2 * Hp:3 * Hp])
        o = _sigmoid(gates[:, 3 * Hp:4 * Hp])
        c_new = f * c_s[...] + i * g
        h_new = o * jnp.tanh(c_new)
        c_s[...] = c_new
        h_s[...] = h_new
        out_ref[pl.ds(r, Bp), :] = h_new     # (Bp, Hp): aligned, unmasked vst
        return carry

    jax.lax.fori_loop(0, K, step, 0, unroll=True)


def lstm_recurrence(x2, wih, whh, b, h0, c0, chunk, Bp, Hp):
    """x2: (Tp*Bp, Ep) f32; wih: (Ep, 4Hp) bf16; whh: (Hp, 4Hp) bf16;
    b: (1, 4Hp) f32; h0/c0: (Bp, Hp) f32 -> out (Tp*Bp, Hp) f32."""
    rows, Ep = x2.shape
    Tp = rows // Bp
    n_steps = Tp // chunk
    rows_per_step = chunk * Bp
    return pl.pallas_call(
        _lstm_rec_kernel,
        out_shape=jax.ShapeDtypeStruct((rows, Hp), jnp.float32),
        grid_spec=pltpu.PrefetchScalarGridSpec(
            num_scalar_prefetch=0,
            grid=(n_steps,),
            in_specs=[
                pl.BlockSpec((rows_per_step, Ep), lambda s: (s, 0)),  # x chunk
                pl.BlockSpec(memory_space=pl.ANY),                    # W_ih (HBM)
                pl.BlockSpec(memory_space=pl.ANY),                    # W_hh (HBM)
                pl.BlockSpec((1, 4 * Hp), lambda s: (0, 0)),          # bias
                pl.BlockSpec((Bp, Hp), lambda s: (0, 0)),             # h0
                pl.BlockSpec((Bp, Hp), lambda s: (0, 0)),             # c0
            ],
            out_specs=pl.BlockSpec((rows_per_step, Hp), lambda s: (s, 0)),
            scratch_shapes=[
                pltpu.VMEM((Ep, 4 * Hp), jnp.bfloat16),               # W_ih resident
                pltpu.VMEM((Hp, 4 * Hp), jnp.bfloat16),               # W_hh resident
                pltpu.VMEM((rows_per_step, 4 * Hp), jnp.float32),     # gx chunk
                pltpu.VMEM((Bp, Hp), jnp.float32),                    # h state
                pltpu.VMEM((Bp, Hp), jnp.float32),                    # c state
                pltpu.SemaphoreType.DMA((2,)),
            ],
        ),
        compiler_params=pltpu.CompilerParams(
            dimension_semantics=("arbitrary",),   # state carried across steps
            vmem_limit_bytes=32 * 1024 * 1024),
    )(x2, wih, whh, b, h0, c0)


# --------------------------------------------------------------------------
# Parameters (matching PyTorch init_weights / nn.LSTM defaults)
# --------------------------------------------------------------------------
def init_params(key, vocab_size, embed_size, hidden_size, num_layers):
    keys = jax.random.split(key, 2 + 4 * num_layers)
    embed = jax.random.uniform(keys[0], (vocab_size, embed_size),
                               jnp.float32, -0.1, 0.1)
    lin_w = jax.random.uniform(keys[1], (hidden_size, vocab_size),
                               jnp.float32, -0.1, 0.1)
    lin_b = jnp.zeros((vocab_size,), jnp.float32)
    bound = 1.0 / (hidden_size ** 0.5)
    layers = []
    for l in range(num_layers):
        in_dim = embed_size if l == 0 else hidden_size
        kk = keys[2 + 4 * l: 2 + 4 * (l + 1)]
        wih = jax.random.uniform(kk[0], (in_dim, 4 * hidden_size),
                                 jnp.float32, -bound, bound)
        whh = jax.random.uniform(kk[1], (hidden_size, 4 * hidden_size),
                                 jnp.float32, -bound, bound)
        bih = jax.random.uniform(kk[2], (4 * hidden_size,),
                                 jnp.float32, -bound, bound)
        bhh = jax.random.uniform(kk[3], (4 * hidden_size,),
                                 jnp.float32, -bound, bound)
        layers.append((wih, whh, (bih + bhh).reshape(1, 4 * hidden_size)))
    return dict(embed=embed, lin_w=lin_w, lin_b=lin_b, layers=layers)


# --------------------------------------------------------------------------
# Forward pass (mirrors RNNLM.forward; `lengths` unused, as in the reference)
# --------------------------------------------------------------------------
def rnnlm_forward(params, tokens, lengths, state):
    del lengths                                   # reference never packs
    h0, c0 = state                                # (L, B, H)
    B, T = tokens.shape
    L, _, H = h0.shape
    V = params["lin_w"].shape[-1]
    E = params["embed"].shape[-1]

    Bp = _round_up(B, 8)                          # sublane-dense batch
    Hp = _round_up(H, 128)                        # lane-dense per-gate width
    Ep = _round_up(E, 128)                        # lane-dense embed width
    chunk = 8                                     # timesteps per grid step
    Tp = _round_up(T, chunk)                      # pad ragged T (no chunk=1)

    # TODO(synk): embedding gather stays in XLA (data-dependent row gather).
    # Gather directly in time-major order -> no activation transpose.
    x = params["embed"][tokens.T]                 # (T, B, E) f32
    x = _pad_axis(_pad_axis(_pad_axis(x, 0, Tp), 1, Bp), 2, Ep)
    x2 = x.reshape(Tp * Bp, Ep)                   # row = t*Bp + b

    h0p = _pad_axis(_pad_axis(h0, 1, Bp), 2, Hp)  # (L, Bp, Hp)
    c0p = _pad_axis(_pad_axis(c0, 1, Bp), 2, Hp)

    hs = []
    out3 = None
    for l, (wih, whh, b) in enumerate(params["layers"]):
        in_pad = Ep if l == 0 else Hp
        wih_p = _pad_axis(_pad_gate_cols(wih, H, Hp), 0,
                          in_pad).astype(jnp.bfloat16)
        whh_p = _pad_axis(_pad_gate_cols(whh, H, Hp), 0,
                          Hp).astype(jnp.bfloat16)
        b_p = _pad_gate_cols(b, H, Hp)            # (1, 4*Hp) f32

        out2 = lstm_recurrence(x2, wih_p, whh_p, b_p,
                               h0p[l], c0p[l], chunk, Bp, Hp)
        out3 = out2.reshape(Tp, Bp, Hp)
        hs.append(out3[T - 1, :B, :H])            # state after last real step
        x2 = out2                                 # next layer input, no reshape

    # Vocab projection (batch-first logits). The small slice + transpose of
    # the real (T, B) rows is the only remaining XLA re-layout.
    xo = jnp.transpose(out3[:T, :B], (1, 0, 2)).reshape(B * T, Hp)
    lin_w_p = _pad_axis(params["lin_w"], 0, Hp)
    logits = matmul_bias(xo, lin_w_p, params["lin_b"]).reshape(B, T, V)
    h = jnp.stack(hs, axis=0)                     # (L, B, H)
    return logits, h


# --------------------------------------------------------------------------
# Pure-JAX f32 reference for the correctness check
# --------------------------------------------------------------------------
def ref_forward(params, tokens, state):
    h0, c0 = state
    emb = params["embed"][tokens]
    x = jnp.transpose(emb, (1, 0, 2))
    hs = []
    for l, (wih, whh, b) in enumerate(params["layers"]):
        def step(carry, xt, wih=wih, whh=whh, b=b):
            h, c = carry
            gates = xt @ wih + h @ whh + b
            H = h.shape[-1]
            i = jax.nn.sigmoid(gates[:, :H])
            f = jax.nn.sigmoid(gates[:, H:2 * H])
            g = jnp.tanh(gates[:, 2 * H:3 * H])
            o = jax.nn.sigmoid(gates[:, 3 * H:])
            c = f * c + i * g
            h = o * jnp.tanh(c)
            return (h, c), h
        (hN, _), ys = jax.lax.scan(step, (h0[l], c0[l]), x)
        x = ys
        hs.append(hN)
    out = jnp.transpose(x, (1, 0, 2))
    logits = out @ params["lin_w"] + params["lin_b"]
    return logits, jnp.stack(hs, 0)


if __name__ == "__main__":
    VOCAB, EMBED, HIDDEN, LAYERS = 50, 32, 32, 2
    B, T = 2, 8

    key = jax.random.PRNGKey(0)
    kp, kt, kh, kc = jax.random.split(key, 4)
    params = init_params(kp, VOCAB, EMBED, HIDDEN, LAYERS)

    tokens = jax.random.randint(kt, (B, T), 0, VOCAB, dtype=jnp.int32)
    lengths = jnp.full((B,), T, dtype=jnp.int32)       # unused (matches spec)
    h0 = jax.random.normal(kh, (LAYERS, B, HIDDEN), jnp.float32) * 0.1
    c0 = jax.random.normal(kc, (LAYERS, B, HIDDEN), jnp.float32) * 0.1

    logits, h = rnnlm_forward(params, tokens, lengths, (h0, c0))
    jax.block_until_ready((logits, h))

    ref_logits, ref_h = ref_forward(params, tokens, (h0, c0))
    assert logits.shape == (B, T, VOCAB) and h.shape == (LAYERS, B, HIDDEN)
    # bf16 matmul operands (f32 accumulation / state) -> loosened tolerance.
    assert jnp.allclose(logits, ref_logits, atol=2e-2, rtol=2e-2), \
        float(jnp.max(jnp.abs(logits - ref_logits)))
    assert jnp.allclose(h, ref_h, atol=2e-2, rtol=2e-2), \
        float(jnp.max(jnp.abs(h - ref_h)))

    print("KERNEL_OK")
</pallas_src>

<mosaic_0001>
module attributes {stable_mosaic.version = 11 : i64} {
  func.func @_lstm_rec_kernel(%arg0: i32, %arg1: memref<64x128xf32, #tpu.memory_space<vmem>>, %arg2: memref<128x512xbf16, #tpu.memory_space<any>>, %arg3: memref<128x512xbf16, #tpu.memory_space<any>>, %arg4: memref<1x512xf32, #tpu.memory_space<vmem>>, %arg5: memref<8x128xf32, #tpu.memory_space<vmem>>, %arg6: memref<8x128xf32, #tpu.memory_space<vmem>>, %arg7: memref<64x128xf32, #tpu.memory_space<vmem>>, %arg8: memref<128x512xbf16, #tpu.memory_space<vmem>>, %arg9: memref<128x512xbf16, #tpu.memory_space<vmem>>, %arg10: memref<64x512xf32, #tpu.memory_space<vmem>>, %arg11: memref<8x128xf32, #tpu.memory_space<vmem>>, %arg12: memref<8x128xf32, #tpu.memory_space<vmem>>, %arg13: memref<2x!tpu.dma_semaphore, #tpu.memory_space<semaphore_mem>>) attributes {dimension_semantics = [#tpu.dimension_semantics<arbitrary>], iteration_bounds = array<i64: 1>, scalar_prefetch = 0 : i64, scratch_operands = 6 : i64, tpu.core_type = #tpu.core_type<tc>, window_params = [{transform_indices = @transform_0, window_bounds = array<i64: 64, 128>}, {}, {}, {pipeline_mode = #tpu.pipeline_mode<synchronous>, transform_indices = @transform_3, window_bounds = array<i64: 1, 512>}, {pipeline_mode = #tpu.pipeline_mode<synchronous>, transform_indices = @transform_4, window_bounds = array<i64: 8, 128>}, {pipeline_mode = #tpu.pipeline_mode<synchronous>, transform_indices = @transform_5, window_bounds = array<i64: 8, 128>}, {transform_indices = @transform_6, window_bounds = array<i64: 64, 128>}]} {
    %c0_i32 = arith.constant 0 : i32
    %0 = arith.cmpi eq, %arg0, %c0_i32 : i32
    %1 = arith.extui %0 : i1 to i32
    %c0_i32_0 = arith.constant 0 : i32
    %2 = arith.cmpi ne, %1, %c0_i32_0 : i32
    scf.if %2 {
      %c0_i32_193 = arith.constant 0 : i32
      %371 = tpu.memref_slice %arg13[%c0_i32_193] : memref<2x!tpu.dma_semaphore, #tpu.memory_space<semaphore_mem>> -> memref<1x!tpu.dma_semaphore, #tpu.memory_space<semaphore_mem>>
      %372 = tpu.memref_squeeze %371 : memref<1x!tpu.dma_semaphore, #tpu.memory_space<semaphore_mem>> -> memref<!tpu.dma_semaphore, #tpu.memory_space<semaphore_mem>>
      tpu.enqueue_dma source(%arg2 : memref<128x512xbf16, #tpu.memory_space<any>>) target(%arg8 : memref<128x512xbf16, #tpu.memory_space<vmem>>) target_semaphore(%372 : memref<!tpu.dma_semaphore, #tpu.memory_space<semaphore_mem>>)
      %c1_i32_194 = arith.constant 1 : i32
      %373 = tpu.memref_slice %arg13[%c1_i32_194] : memref<2x!tpu.dma_semaphore, #tpu.memory_space<semaphore_mem>> -> memref<1x!tpu.dma_semaphore, #tpu.memory_space<semaphore_mem>>
      %374 = tpu.memref_squeeze %373 : memref<1x!tpu.dma_semaphore, #tpu.memory_space<semaphore_mem>> -> memref<!tpu.dma_semaphore, #tpu.memory_space<semaphore_mem>>
      tpu.enqueue_dma source(%arg3 : memref<128x512xbf16, #tpu.memory_space<any>>) target(%arg9 : memref<128x512xbf16, #tpu.memory_space<vmem>>) target_semaphore(%374 : memref<!tpu.dma_semaphore, #tpu.memory_space<semaphore_mem>>)
      %c0_i32_195 = arith.constant 0 : i32
      %375 = tpu.memref_slice %arg13[%c0_i32_195] : memref<2x!tpu.dma_semaphore, #tpu.memory_space<semaphore_mem>> -> memref<1x!tpu.dma_semaphore, #tpu.memory_space<semaphore_mem>>
      %376 = tpu.memref_squeeze %375 : memref<1x!tpu.dma_semaphore, #tpu.memory_space<semaphore_mem>> -> memref<!tpu.dma_semaphore, #tpu.memory_space<semaphore_mem>>
      tpu.wait_dma2 semaphore(%376 : memref<!tpu.dma_semaphore, #tpu.memory_space<semaphore_mem>>) src(%arg2 : memref<128x512xbf16, #tpu.memory_space<any>>) dst(%arg8 : memref<128x512xbf16, #tpu.memory_space<vmem>>)
      %c1_i32_196 = arith.constant 1 : i32
      %377 = tpu.memref_slice %arg13[%c1_i32_196] : memref<2x!tpu.dma_semaphore, #tpu.memory_space<semaphore_mem>> -> memref<1x!tpu.dma_semaphore, #tpu.memory_space<semaphore_mem>>
      %378 = tpu.memref_squeeze %377 : memref<1x!tpu.dma_semaphore, #tpu.memory_space<semaphore_mem>> -> memref<!tpu.dma_semaphore, #tpu.memory_space<semaphore_mem>>
      tpu.wait_dma2 semaphore(%378 : memref<!tpu.dma_semaphore, #tpu.memory_space<semaphore_mem>>) src(%arg3 : memref<128x512xbf16, #tpu.memory_space<any>>) dst(%arg9 : memref<128x512xbf16, #tpu.memory_space<vmem>>)
      %c0_197 = arith.constant 0 : index
      %c0_198 = arith.constant 0 : index
      %379 = vector.load %arg5[%c0_197, %c0_198] : memref<8x128xf32, #tpu.memory_space<vmem>>, vector<8x128xf32>
      %c0_199 = arith.constant 0 : index
      %c0_200 = arith.constant 0 : index
      %380 = vector.load %arg11[%c0_199, %c0_200] : memref<8x128xf32, #tpu.memory_space<vmem>>, vector<8x128xf32>
      tpu.vector_store %arg11[%c0_199, %c0_200], %379 {strides = array<i32>} : memref<8x128xf32, #tpu.memory_space<vmem>>, vector<8x128xf32>,
      %c0_201 = arith.constant 0 : index
      %c0_202 = arith.constant 0 : index
      %381 = vector.load %arg6[%c0_201, %c0_202] : memref<8x128xf32, #tpu.memory_space<vmem>>, vector<8x128xf32>
      %c0_203 = arith.constant 0 : index
      %c0_204 = arith.constant 0 : index
      %382 = vector.load %arg12[%c0_203, %c0_204] : memref<8x128xf32, #tpu.memory_space<vmem>>, vector<8x128xf32>
      tpu.vector_store %arg12[%c0_203, %c0_204], %381 {strides = array<i32>} : memref<8x128xf32, #tpu.memory_space<vmem>>, vector<8x128xf32>,
    } else {
    }
    %c0 = arith.constant 0 : index
    %c0_1 = arith.constant 0 : index
    %3 = vector.load %arg1[%c0, %c0_1] : memref<64x128xf32, #tpu.memory_space<vmem>>, vector<64x128xf32>
    %4 = arith.truncf %3 : vector<64x128xf32> to vector<64x128xbf16>
    %c0_2 = arith.constant 0 : index
    %c0_3 = arith.constant 0 : index
    %5 = vector.load %arg8[%c0_2, %c0_3] : memref<128x512xbf16, #tpu.memory_space<vmem>>, vector<128x512xbf16>
    %cst = arith.constant dense<0.000000e+00> : vector<64x512xf32>
    %6 = tpu.matmul %4, %5, %cst {dimension_numbers = #tpu.dot_dimension_numbers<[1], [0], [0], [1], [0, 0, 1, 1], [], []>} : vector<64x128xbf16>, vector<128x512xbf16>, vector<64x512xf32> -> vector<64x512xf32>
    %c0_4 = arith.constant 0 : index
    %c0_5 = arith.constant 0 : index
    %7 = vector.load %arg4[%c0_4, %c0_5] : memref<1x512xf32, #tpu.memory_space<vmem>>, vector<1x512xf32>
    %8 = vector.broadcast %7 : vector<1x512xf32> to vector<64x512xf32>
    %9 = arith.addf %6, %8 : vector<64x512xf32>
    %c0_6 = arith.constant 0 : index
    %c0_7 = arith.constant 0 : index
    %10 = vector.load %arg10[%c0_6, %c0_7] : memref<64x512xf32, #tpu.memory_space<vmem>>, vector<64x512xf32>
    tpu.vector_store %arg10[%c0_6, %c0_7], %9 {strides = array<i32>} : memref<64x512xf32, #tpu.memory_space<vmem>>, vector<64x512xf32>,
    %c0_i32_8 = arith.constant 0 : i32
    %c8_i32 = arith.constant 8 : i32
    %11 = arith.muli %c0_i32_8, %c8_i32 : i32
    %12 = tpu.assume_multiple %11, 8 : i32
    %13 = arith.index_cast %12 : i32 to index
    %c0_9 = arith.constant 0 : index
    %14 = vector.load %arg10[%13, %c0_9] : memref<64x512xf32, #tpu.memory_space<vmem>>, vector<8x512xf32>
    %c0_10 = arith.constant 0 : index
    %c0_11 = arith.constant 0 : index
    %15 = vector.load %arg11[%c0_10, %c0_11] : memref<8x128xf32, #tpu.memory_space<vmem>>, vector<8x128xf32>
    %16 = arith.truncf %15 : vector<8x128xf32> to vector<8x128xbf16>
    %c0_12 = arith.constant 0 : index
    %c0_13 = arith.constant 0 : index
    %17 = vector.load %arg9[%c0_12, %c0_13] : memref<128x512xbf16, #tpu.memory_space<vmem>>, vector<128x512xbf16>
    %cst_14 = arith.constant dense<0.000000e+00> : vector<8x512xf32>
    %18 = tpu.matmul %16, %17, %cst_14 {dimension_numbers = #tpu.dot_dimension_numbers<[1], [0], [0], [1], [0, 0, 1, 1], [], []>} : vector<8x128xbf16>, vector<128x512xbf16>, vector<8x512xf32> -> vector<8x512xf32>
    %19 = arith.addf %14, %18 : vector<8x512xf32>
    %20 = vector.extract_strided_slice %19 {offsets = [0, 0], sizes = [8, 128], strides = [1, 1]} : vector<8x512xf32> to vector<8x128xf32>
    %cst_15 = arith.constant 5.000000e-01 : f32
    %21 = vector.broadcast %cst_15 : f32 to vector<8x128xf32>
    %22 = arith.mulf %21, %20 : vector<8x128xf32>
    %23 = math.tanh %22 : vector<8x128xf32>
    %cst_16 = arith.constant 1.000000e+00 : f32
    %24 = vector.broadcast %cst_16 : f32 to vector<8x128xf32>
    %25 = arith.addf %23, %24 : vector<8x128xf32>
    %cst_17 = arith.constant 5.000000e-01 : f32
    %26 = vector.broadcast %cst_17 : f32 to vector<8x128xf32>
    %27 = arith.mulf %26, %25 : vector<8x128xf32>
    %28 = vector.extract_strided_slice %19 {offsets = [0, 128], sizes = [8, 128], strides = [1, 1]} : vector<8x512xf32> to vector<8x128xf32>
    %cst_18 = arith.constant 5.000000e-01 : f32
    %29 = vector.broadcast %cst_18 : f32 to vector<8x128xf32>
    %30 = arith.mulf %29, %28 : vector<8x128xf32>
    %31 = math.tanh %30 : vector<8x128xf32>
    %cst_19 = arith.constant 1.000000e+00 : f32
    %32 = vector.broadcast %cst_19 : f32 to vector<8x128xf32>
    %33 = arith.addf %31, %32 : vector<8x128xf32>
    %cst_20 = arith.constant 5.000000e-01 : f32
    %34 = vector.broadcast %cst_20 : f32 to vector<8x128xf32>
    %35 = arith.mulf %34, %33 : vector<8x128xf32>
    %36 = vector.extract_strided_slice %19 {offsets = [0, 256], sizes = [8, 128], strides = [1, 1]} : vector<8x512xf32> to vector<8x128xf32>
    %37 = math.tanh %36 : vector<8x128xf32>
    %38 = vector.extract_strided_slice %19 {offsets = [0, 384], sizes = [8, 128], strides = [1, 1]} : vector<8x512xf32> to vector<8x128xf32>
    %cst_21 = arith.constant 5.000000e-01 : f32
    %39 = vector.broadcast %cst_21 : f32 to vector<8x128xf32>
    %40 = arith.mulf %39, %38 : vector<8x128xf32>
    %41 = math.tanh %40 : vector<8x128xf32>
    %cst_22 = arith.constant 1.000000e+00 : f32
    %42 = vector.broadcast %cst_22 : f32 to vector<8x128xf32>
    %43 = arith.addf %41, %42 : vector<8x128xf32>
    %cst_23 = arith.constant 5.000000e-01 : f32
    %44 = vector.broadcast %cst_23 : f32 to vector<8x128xf32>
    %45 = arith.mulf %44, %43 : vector<8x128xf32>
    %c0_24 = arith.constant 0 : index
    %c0_25 = arith.constant 0 : index
    %46 = vector.load %arg12[%c0_24, %c0_25] : memref<8x128xf32, #tpu.memory_space<vmem>>, vector<8x128xf32>
    %47 = arith.mulf %35, %46 : vector<8x128xf32>
    %48 = arith.mulf %27, %37 : vector<8x128xf32>
    %49 = arith.addf %47, %48 : vector<8x128xf32>
    %50 = math.tanh %49 : vector<8x128xf32>
    %51 = arith.mulf %45, %50 : vector<8x128xf32>
    %c0_26 = arith.constant 0 : index
    %c0_27 = arith.constant 0 : index
    %52 = vector.load %arg12[%c0_26, %c0_27] : memref<8x128xf32, #tpu.memory_space<vmem>>, vector<8x128xf32>
    tpu.vector_store %arg12[%c0_26, %c0_27], %49 {strides = array<i32>} : memref<8x128xf32, #tpu.memory_space<vmem>>, vector<8x128xf32>,
    %c0_28 = arith.constant 0 : index
    %c0_29 = arith.constant 0 : index
    %53 = vector.load %arg11[%c0_28, %c0_29] : memref<8x128xf32, #tpu.memory_space<vmem>>, vector<8x128xf32>
    tpu.vector_store %arg11[%c0_28, %c0_29], %51 {strides = array<i32>} : memref<8x128xf32, #tpu.memory_space<vmem>>, vector<8x128xf32>,
    %54 = arith.index_cast %12 : i32 to index
    %c0_30 = arith.constant 0 : index
    %55 = vector.load %arg7[%54, %c0_30] : memref<64x128xf32, #tpu.memory_space<vmem>>, vector<8x128xf32>
    tpu.vector_store %arg7[%54, %c0_30], %51 {strides = array<i32>} : memref<64x128xf32, #tpu.memory_space<vmem>>, vector<8x128xf32>,
    %c1_i32 = arith.constant 1 : i32
    %c8_i32_31 = arith.constant 8 : i32
    %56 = arith.muli %c1_i32, %c8_i32_31 : i32
    %57 = tpu.assume_multiple %56, 8 : i32
    %58 = arith.index_cast %57 : i32 to index
    %c0_32 = arith.constant 0 : index
    %59 = vector.load %arg10[%58, %c0_32] : memref<64x512xf32, #tpu.memory_space<vmem>>, vector<8x512xf32>
    %c0_33 = arith.constant 0 : index
    %c0_34 = arith.constant 0 : index
    %60 = vector.load %arg11[%c0_33, %c0_34] : memref<8x128xf32, #tpu.memory_space<vmem>>, vector<8x128xf32>
    %61 = arith.truncf %60 : vector<8x128xf32> to vector<8x128xbf16>
    %c0_35 = arith.constant 0 : index
    %c0_36 = arith.constant 0 : index
    %62 = vector.load %arg9[%c0_35, %c0_36] : memref<128x512xbf16, #tpu.memory_space<vmem>>, vector<128x512xbf16>
    %cst_37 = arith.constant dense<0.000000e+00> : vector<8x512xf32>
    %63 = tpu.matmul %61, %62, %cst_37 {dimension_numbers = #tpu.dot_dimension_numbers<[1], [0], [0], [1], [0, 0, 1, 1], [], []>} : vector<8x128xbf16>, vector<128x512xbf16>, vector<8x512xf32> -> vector<8x512xf32>
    %64 = arith.addf %59, %63 : vector<8x512xf32>
    %65 = vector.extract_strided_slice %64 {offsets = [0, 0], sizes = [8, 128], strides = [1, 1]} : vector<8x512xf32> to vector<8x128xf32>
    %cst_38 = arith.constant 5.000000e-01 : f32
    %66 = vector.broadcast %cst_38 : f32 to vector<8x128xf32>
    %67 = arith.mulf %66, %65 : vector<8x128xf32>
    %68 = math.tanh %67 : vector<8x128xf32>
    %cst_39 = arith.constant 1.000000e+00 : f32
    %69 = vector.broadcast %cst_39 : f32 to vector<8x128xf32>
    %70 = arith.addf %68, %69 : vector<8x128xf32>
    %cst_40 = arith.constant 5.000000e-01 : f32
    %71 = vector.broadcast %cst_40 : f32 to vector<8x128xf32>
    %72 = arith.mulf %71, %70 : vector<8x128xf32>
    %73 = vector.extract_strided_slice %64 {offsets = [0, 128], sizes = [8, 128], strides = [1, 1]} : vector<8x512xf32> to vector<8x128xf32>
    %cst_41 = arith.constant 5.000000e-01 : f32
    %74 = vector.broadcast %cst_41 : f32 to vector<8x128xf32>
    %75 = arith.mulf %74, %73 : vector<8x128xf32>
    %76 = math.tanh %75 : vector<8x128xf32>
    %cst_42 = arith.constant 1.000000e+00 : f32
    %77 = vector.broadcast %cst_42 : f32 to vector<8x128xf32>
    %78 = arith.addf %76, %77 : vector<8x128xf32>
    %cst_43 = arith.constant 5.000000e-01 : f32
    %79 = vector.broadcast %cst_43 : f32 to vector<8x128xf32>
    %80 = arith.mulf %79, %78 : vector<8x128xf32>
    %81 = vector.extract_strided_slice %64 {offsets = [0, 256], sizes = [8, 128], strides = [1, 1]} : vector<8x512xf32> to vector<8x128xf32>
    %82 = math.tanh %81 : vector<8x128xf32>
    %83 = vector.extract_strided_slice %64 {offsets = [0, 384], sizes = [8, 128], strides = [1, 1]} : vector<8x512xf32> to vector<8x128xf32>
    %cst_44 = arith.constant 5.000000e-01 : f32
    %84 = vector.broadcast %cst_44 : f32 to vector<8x128xf32>
    %85 = arith.mulf %84, %83 : vector<8x128xf32>
    %86 = math.tanh %85 : vector<8x128xf32>
    %cst_45 = arith.constant 1.000000e+00 : f32
    %87 = vector.broadcast %cst_45 : f32 to vector<8x128xf32>
    %88 = arith.addf %86, %87 : vector<8x128xf32>
    %cst_46 = arith.constant 5.000000e-01 : f32
    %89 = vector.broadcast %cst_46 : f32 to vector<8x128xf32>
    %90 = arith.mulf %89, %88 : vector<8x128xf32>
    %c0_47 = arith.constant 0 : index
    %c0_48 = arith.constant 0 : index
    %91 = vector.load %arg12[%c0_47, %c0_48] : memref<8x128xf32, #tpu.memory_space<vmem>>, vector<8x128xf32>
    %92 = arith.mulf %80, %91 : vector<8x128xf32>
    %93 = arith.mulf %72, %82 : vector<8x128xf32>
    %94 = arith.addf %92, %93 : vector<8x128xf32>
    %95 = math.tanh %94 : vector<8x128xf32>
    %96 = arith.mulf %90, %95 : vector<8x128xf32>
    %c0_49 = arith.constant 0 : index
    %c0_50 = arith.constant 0 : index
    %97 = vector.load %arg12[%c0_49, %c0_50] : memref<8x128xf32, #tpu.memory_space<vmem>>, vector<8x128xf32>
    tpu.vector_store %arg12[%c0_49, %c0_50], %94 {strides = array<i32>} : memref<8x128xf32, #tpu.memory_space<vmem>>, vector<8x128xf32>,
    %c0_51 = arith.constant 0 : index
    %c0_52 = arith.constant 0 : index
    %98 = vector.load %arg11[%c0_51, %c0_52] : memref<8x128xf32, #tpu.memory_space<vmem>>, vector<8x128xf32>
    tpu.vector_store %arg11[%c0_51, %c0_52], %96 {strides = array<i32>} : memref<8x128xf32, #tpu.memory_space<vmem>>, vector<8x128xf32>,
    %99 = arith.index_cast %57 : i32 to index
    %c0_53 = arith.constant 0 : index
    %100 = vector.load %arg7[%99, %c0_53] : memref<64x128xf32, #tpu.memory_space<vmem>>, vector<8x128xf32>
    tpu.vector_store %arg7[%99, %c0_53], %96 {strides = array<i32>} : memref<64x128xf32, #tpu.memory_space<vmem>>, vector<8x128xf32>,
    %c2_i32 = arith.constant 2 : i32
    %c8_i32_54 = arith.constant 8 : i32
    %101 = arith.muli %c2_i32, %c8_i32_54 : i32
    %102 = tpu.assume_multiple %101, 8 : i32
    %103 = arith.index_cast %102 : i32 to index
    %c0_55 = arith.constant 0 : index
    %104 = vector.load %arg10[%103, %c0_55] : memref<64x512xf32, #tpu.memory_space<vmem>>, vector<8x512xf32>
    %c0_56 = arith.constant 0 : index
    %c0_57 = arith.constant 0 : index
    %105 = vector.load %arg11[%c0_56, %c0_57] : memref<8x128xf32, #tpu.memory_space<vmem>>, vector<8x128xf32>
    %106 = arith.truncf %105 : vector<8x128xf32> to vector<8x128xbf16>
    %c0_58 = arith.constant 0 : index
    %c0_59 = arith.constant 0 : index
    %107 = vector.load %arg9[%c0_58, %c0_59] : memref<128x512xbf16, #tpu.memory_space<vmem>>, vector<128x512xbf16>
    %cst_60 = arith.constant dense<0.000000e+00> : vector<8x512xf32>
    %108 = tpu.matmul %106, %107, %cst_60 {dimension_numbers = #tpu.dot_dimension_numbers<[1], [0], [0], [1], [0, 0, 1, 1], [], []>} : vector<8x128xbf16>, vector<128x512xbf16>, vector<8x512xf32> -> vector<8x512xf32>
    %109 = arith.addf %104, %108 : vector<8x512xf32>
    %110 = vector.extract_strided_slice %109 {offsets = [0, 0], sizes = [8, 128], strides = [1, 1]} : vector<8x512xf32> to vector<8x128xf32>
    %cst_61 = arith.constant 5.000000e-01 : f32
    %111 = vector.broadcast %cst_61 : f32 to vector<8x128xf32>
    %112 = arith.mulf %111, %110 : vector<8x128xf32>
    %113 = math.tanh %112 : vector<8x128xf32>
    %cst_62 = arith.constant 1.000000e+00 : f32
    %114 = vector.broadcast %cst_62 : f32 to vector<8x128xf32>
    %115 = arith.addf %113, %114 : vector<8x128xf32>
    %cst_63 = arith.constant 5.000000e-01 : f32
    %116 = vector.broadcast %cst_63 : f32 to vector<8x128xf32>
    %117 = arith.mulf %116, %115 : vector<8x128xf32>
    %118 = vector.extract_strided_slice %109 {offsets = [0, 128], sizes = [8, 128], strides = [1, 1]} : vector<8x512xf32> to vector<8x128xf32>
    %cst_64 = arith.constant 5.000000e-01 : f32
    %119 = vector.broadcast %cst_64 : f32 to vector<8x128xf32>
    %120 = arith.mulf %119, %118 : vector<8x128xf32>
    %121 = math.tanh %120 : vector<8x128xf32>
    %cst_65 = arith.constant 1.000000e+00 : f32
    %122 = vector.broadcast %cst_65 : f32 to vector<8x128xf32>
    %123 = arith.addf %121, %122 : vector<8x128xf32>
    %cst_66 = arith.constant 5.000000e-01 : f32
    %124 = vector.broadcast %cst_66 : f32 to vector<8x128xf32>
    %125 = arith.mulf %124, %123 : vector<8x128xf32>
    %126 = vector.extract_strided_slice %109 {offsets = [0, 256], sizes = [8, 128], strides = [1, 1]} : vector<8x512xf32> to vector<8x128xf32>
    %127 = math.tanh %126 : vector<8x128xf32>
    %128 = vector.extract_strided_slice %109 {offsets = [0, 384], sizes = [8, 128], strides = [1, 1]} : vector<8x512xf32> to vector<8x128xf32>
    %cst_67 = arith.constant 5.000000e-01 : f32
    %129 = vector.broadcast %cst_67 : f32 to vector<8x128xf32>
    %130 = arith.mulf %129, %128 : vector<8x128xf32>
    %131 = math.tanh %130 : vector<8x128xf32>
    %cst_68 = arith.constant 1.000000e+00 : f32
    %132 = vector.broadcast %cst_68 : f32 to vector<8x128xf32>
    %133 = arith.addf %131, %132 : vector<8x128xf32>
    %cst_69 = arith.constant 5.000000e-01 : f32
    %134 = vector.broadcast %cst_69 : f32 to vector<8x128xf32>
    %135 = arith.mulf %134, %133 : vector<8x128xf32>
    %c0_70 = arith.constant 0 : index
    %c0_71 = arith.constant 0 : index
    %136 = vector.load %arg12[%c0_70, %c0_71] : memref<8x128xf32, #tpu.memory_space<vmem>>, vector<8x128xf32>
    %137 = arith.mulf %125, %136 : vector<8x128xf32>
    %138 = arith.mulf %117, %127 : vector<8x128xf32>
    %139 = arith.addf %137, %138 : vector<8x128xf32>
    %140 = math.tanh %139 : vector<8x128xf32>
    %141 = arith.mulf %135, %140 : vector<8x128xf32>
    %c0_72 = arith.constant 0 : index
    %c0_73 = arith.constant 0 : index
    %142 = vector.load %arg12[%c0_72, %c0_73] : memref<8x128xf32, #tpu.memory_space<vmem>>, vector<8x128xf32>
    tpu.vector_store %arg12[%c0_72, %c0_73], %139 {strides = array<i32>} : memref<8x128xf32, #tpu.memory_space<vmem>>, vector<8x128xf32>,
    %c0_74 = arith.constant 0 : index
    %c0_75 = arith.constant 0 : index
    %143 = vector.load %arg11[%c0_74, %c0_75] : memref<8x128xf32, #tpu.memory_space<vmem>>, vector<8x128xf32>
    tpu.vector_store %arg11[%c0_74, %c0_75], %141 {strides = array<i32>} : memref<8x128xf32, #tpu.memory_space<vmem>>, vector<8x128xf32>,
    %144 = arith.index_cast %102 : i32 to index
    %c0_76 = arith.constant 0 : index
    %145 = vector.load %arg7[%144, %c0_76] : memref<64x128xf32, #tpu.memory_space<vmem>>, vector<8x128xf32>
    tpu.vector_store %arg7[%144, %c0_76], %141 {strides = array<i32>} : memref<64x128xf32, #tpu.memory_space<vmem>>, vector<8x128xf32>,
    %c3_i32 = arith.constant 3 : i32
    %c8_i32_77 = arith.constant 8 : i32
    %146 = arith.muli %c3_i32, %c8_i32_77 : i32
    %147 = tpu.assume_multiple %146, 8 : i32
    %148 = arith.index_cast %147 : i32 to index
    %c0_78 = arith.constant 0 : index
    %149 = vector.load %arg10[%148, %c0_78] : memref<64x512xf32, #tpu.memory_space<vmem>>, vector<8x512xf32>
    %c0_79 = arith.constant 0 : index
    %c0_80 = arith.constant 0 : index
    %150 = vector.load %arg11[%c0_79, %c0_80] : memref<8x128xf32, #tpu.memory_space<vmem>>, vector<8x128xf32>
    %151 = arith.truncf %150 : vector<8x128xf32> to vector<8x128xbf16>
    %c0_81 = arith.constant 0 : index
    %c0_82 = arith.constant 0 : index
    %152 = vector.load %arg9[%c0_81, %c0_82] : memref<128x512xbf16, #tpu.memory_space<vmem>>, vector<128x512xbf16>
    %cst_83 = arith.constant dense<0.000000e+00> : vector<8x512xf32>
    %153 = tpu.matmul %151, %152, %cst_83 {dimension_numbers = #tpu.dot_dimension_numbers<[1], [0], [0], [1], [0, 0, 1, 1], [], []>} : vector<8x128xbf16>, vector<128x512xbf16>, vector<8x512xf32> -> vector<8x512xf32>
    %154 = arith.addf %149, %153 : vector<8x512xf32>
    %155 = vector.extract_strided_slice %154 {offsets = [0, 0], sizes = [8, 128], strides = [1, 1]} : vector<8x512xf32> to vector<8x128xf32>
    %cst_84 = arith.constant 5.000000e-01 : f32
    %156 = vector.broadcast %cst_84 : f32 to vector<8x128xf32>
    %157 = arith.mulf %156, %155 : vector<8x128xf32>
    %158 = math.tanh %157 : vector<8x128xf32>
    %cst_85 = arith.constant 1.000000e+00 : f32
    %159 = vector.broadcast %cst_85 : f32 to vector<8x128xf32>
    %160 = arith.addf %158, %159 : vector<8x128xf32>
    %cst_86 = arith.constant 5.000000e-01 : f32
    %161 = vector.broadcast %cst_86 : f32 to vector<8x128xf32>
    %162 = arith.mulf %161, %160 : vector<8x128xf32>
    %163 = vector.extract_strided_slice %154 {offsets = [0, 128], sizes = [8, 128], strides = [1, 1]} : vector<8x512xf32> to vector<8x128xf32>
    %cst_87 = arith.constant 5.000000e-01 : f32
    %164 = vector.broadcast %cst_87 : f32 to vector<8x128xf32>
    %165 = arith.mulf %164, %163 : vector<8x128xf32>
    %166 = math.tanh %165 : vector<8x128xf32>
    %cst_88 = arith.constant 1.000000e+00 : f32
    %167 = vector.broadcast %cst_88 : f32 to vector<8x128xf32>
    %168 = arith.addf %166, %167 : vector<8x128xf32>
    %cst_89 = arith.constant 5.000000e-01 : f32
    %169 = vector.broadcast %cst_89 : f32 to vector<8x128xf32>
    %170 = arith.mulf %169, %168 : vector<8x128xf32>
    %171 = vector.extract_strided_slice %154 {offsets = [0, 256], sizes = [8, 128], strides = [1, 1]} : vector<8x512xf32> to vector<8x128xf32>
    %172 = math.tanh %171 : vector<8x128xf32>
    %173 = vector.extract_strided_slice %154 {offsets = [0, 384], sizes = [8, 128], strides = [1, 1]} : vector<8x512xf32> to vector<8x128xf32>
    %cst_90 = arith.constant 5.000000e-01 : f32
    %174 = vector.broadcast %cst_90 : f32 to vector<8x128xf32>
    %175 = arith.mulf %174, %173 : vector<8x128xf32>
    %176 = math.tanh %175 : vector<8x128xf32>
    %cst_91 = arith.constant 1.000000e+00 : f32
    %177 = vector.broadcast %cst_91 : f32 to vector<8x128xf32>
    %178 = arith.addf %176, %177 : vector<8x128xf32>
    %cst_92 = arith.constant 5.000000e-01 : f32
    %179 = vector.broadcast %cst_92 : f32 to vector<8x128xf32>
    %180 = arith.mulf %179, %178 : vector<8x128xf32>
    %c0_93 = arith.constant 0 : index
    %c0_94 = arith.constant 0 : index
    %181 = vector.load %arg12[%c0_93, %c0_94] : memref<8x128xf32, #tpu.memory_space<vmem>>, vector<8x128xf32>
    %182 = arith.mulf %170, %181 : vector<8x128xf32>
    %183 = arith.mulf %162, %172 : vector<8x128xf32>
    %184 = arith.addf %182, %183 : vector<8x128xf32>
    %185 = math.tanh %184 : vector<8x128xf32>
    %186 = arith.mulf %180, %185 : vector<8x128xf32>
    %c0_95 = arith.constant 0 : index
    %c0_96 = arith.constant 0 : index
    %187 = vector.load %arg12[%c0_95, %c0_96] : memref<8x128xf32, #tpu.memory_space<vmem>>, vector<8x128xf32>
    tpu.vector_store %arg12[%c0_95, %c0_96], %184 {strides = array<i32>} : memref<8x128xf32, #tpu.memory_space<vmem>>, vector<8x128xf32>,
    %c0_97 = arith.constant 0 : index
    %c0_98 = arith.constant 0 : index
    %188 = vector.load %arg11[%c0_97, %c0_98] : memref<8x128xf32, #tpu.memory_space<vmem>>, vector<8x128xf32>
    tpu.vector_store %arg11[%c0_97, %c0_98], %186 {strides = array<i32>} : memref<8x128xf32, #tpu.memory_space<vmem>>, vector<8x128xf32>,
    %189 = arith.index_cast %147 : i32 to index
    %c0_99 = arith.constant 0 : index
    %190 = vector.load %arg7[%189, %c0_99] : memref<64x128xf32, #tpu.memory_space<vmem>>, vector<8x128xf32>
    tpu.vector_store %arg7[%189, %c0_99], %186 {strides = array<i32>} : memref<64x128xf32, #tpu.memory_space<vmem>>, vector<8x128xf32>,
    %c4_i32 = arith.constant 4 : i32
    %c8_i32_100 = arith.constant 8 : i32
    %191 = arith.muli %c4_i32, %c8_i32_100 : i32
    %192 = tpu.assume_multiple %191, 8 : i32
    %193 = arith.index_cast %192 : i32 to index
    %c0_101 = arith.constant 0 : index
    %194 = vector.load %arg10[%193, %c0_101] : memref<64x512xf32, #tpu.memory_space<vmem>>, vector<8x512xf32>
    %c0_102 = arith.constant 0 : index
    %c0_103 = arith.constant 0 : index
    %195 = vector.load %arg11[%c0_102, %c0_103] : memref<8x128xf32, #tpu.memory_space<vmem>>, vector<8x128xf32>
    %196 = arith.truncf %195 : vector<8x128xf32> to vector<8x128xbf16>
    %c0_104 = arith.constant 0 : index
    %c0_105 = arith.constant 0 : index
    %197 = vector.load %arg9[%c0_104, %c0_105] : memref<128x512xbf16, #tpu.memory_space<vmem>>, vector<128x512xbf16>
    %cst_106 = arith.constant dense<0.000000e+00> : vector<8x512xf32>
    %198 = tpu.matmul %196, %197, %cst_106 {dimension_numbers = #tpu.dot_dimension_numbers<[1], [0], [0], [1], [0, 0, 1, 1], [], []>} : vector<8x128xbf16>, vector<128x512xbf16>, vector<8x512xf32> -> vector<8x512xf32>
    %199 = arith.addf %194, %198 : vector<8x512xf32>
    %200 = vector.extract_strided_slice %199 {offsets = [0, 0], sizes = [8, 128], strides = [1, 1]} : vector<8x512xf32> to vector<8x128xf32>
    %cst_107 = arith.constant 5.000000e-01 : f32
    %201 = vector.broadcast %cst_107 : f32 to vector<8x128xf32>
    %202 = arith.mulf %201, %200 : vector<8x128xf32>
    %203 = math.tanh %202 : vector<8x128xf32>
    %cst_108 = arith.constant 1.000000e+00 : f32
    %204 = vector.broadcast %cst_108 : f32 to vector<8x128xf32>
    %205 = arith.addf %203, %204 : vector<8x128xf32>
    %cst_109 = arith.constant 5.000000e-01 : f32
    %206 = vector.broadcast %cst_109 : f32 to vector<8x128xf32>
    %207 = arith.mulf %206, %205 : vector<8x128xf32>
    %208 = vector.extract_strided_slice %199 {offsets = [0, 128], sizes = [8, 128], strides = [1, 1]} : vector<8x512xf32> to vector<8x128xf32>
    %cst_110 = arith.constant 5.000000e-01 : f32
    %209 = vector.broadcast %cst_110 : f32 to vector<8x128xf32>
    %210 = arith.mulf %209, %208 : vector<8x128xf32>
    %211 = math.tanh %210 : vector<8x128xf32>
    %cst_111 = arith.constant 1.000000e+00 : f32
    %212 = vector.broadcast %cst_111 : f32 to vector<8x128xf32>
    %213 = arith.addf %211, %212 : vector<8x128xf32>
    %cst_112 = arith.constant 5.000000e-01 : f32
    %214 = vector.broadcast %cst_112 : f32 to vector<8x128xf32>
    %215 = arith.mulf %214, %213 : vector<8x128xf32>
    %216 = vector.extract_strided_slice %199 {offsets = [0, 256], sizes = [8, 128], strides = [1, 1]} : vector<8x512xf32> to vector<8x128xf32>
    %217 = math.tanh %216 : vector<8x128xf32>
    %218 = vector.extract_strided_slice %199 {offsets = [0, 384], sizes = [8, 128], strides = [1, 1]} : vector<8x512xf32> to vector<8x128xf32>
    %cst_113 = arith.constant 5.000000e-01 : f32
    %219 = vector.broadcast %cst_113 : f32 to vector<8x128xf32>
    %220 = arith.mulf %219, %218 : vector<8x128xf32>
    %221 = math.tanh %220 : vector<8x128xf32>
    %cst_114 = arith.constant 1.000000e+00 : f32
    %222 = vector.broadcast %cst_114 : f32 to vector<8x128xf32>
    %223 = arith.addf %221, %222 : vector<8x128xf32>
    %cst_115 = arith.constant 5.000000e-01 : f32
    %224 = vector.broadcast %cst_115 : f32 to vector<8x128xf32>
    %225 = arith.mulf %224, %223 : vector<8x128xf32>
    %c0_116 = arith.constant 0 : index
    %c0_117 = arith.constant 0 : index
    %226 = vector.load %arg12[%c0_116, %c0_117] : memref<8x128xf32, #tpu.memory_space<vmem>>, vector<8x128xf32>
    %227 = arith.mulf %215, %226 : vector<8x128xf32>
    %228 = arith.mulf %207, %217 : vector<8x128xf32>
    %229 = arith.addf %227, %228 : vector<8x128xf32>
    %230 = math.tanh %229 : vector<8x128xf32>
    %231 = arith.mulf %225, %230 : vector<8x128xf32>
    %c0_118 = arith.constant 0 : index
    %c0_119 = arith.constant 0 : index
    %232 = vector.load %arg12[%c0_118, %c0_119] : memref<8x128xf32, #tpu.memory_space<vmem>>, vector<8x128xf32>
    tpu.vector_store %arg12[%c0_118, %c0_119], %229 {strides = array<i32>} : memref<8x128xf32, #tpu.memory_space<vmem>>, vector<8x128xf32>,
    %c0_120 = arith.constant 0 : index
    %c0_121 = arith.constant 0 : index
    %233 = vector.load %arg11[%c0_120, %c0_121] : memref<8x128xf32, #tpu.memory_space<vmem>>, vector<8x128xf32>
    tpu.vector_store %arg11[%c0_120, %c0_121], %231 {strides = array<i32>} : memref<8x128xf32, #tpu.memory_space<vmem>>, vector<8x128xf32>,
    %234 = arith.index_cast %192 : i32 to index
    %c0_122 = arith.constant 0 : index
    %235 = vector.load %arg7[%234, %c0_122] : memref<64x128xf32, #tpu.memory_space<vmem>>, vector<8x128xf32>
    tpu.vector_store %arg7[%234, %c0_122], %231 {strides = array<i32>} : memref<64x128xf32, #tpu.memory_space<vmem>>, vector<8x128xf32>,
    %c5_i32 = arith.constant 5 : i32
    %c8_i32_123 = arith.constant 8 : i32
    %236 = arith.muli %c5_i32, %c8_i32_123 : i32
    %237 = tpu.assume_multiple %236, 8 : i32
    %238 = arith.index_cast %237 : i32 to index
    %c0_124 = arith.constant 0 : index
    %239 = vector.load %arg10[%238, %c0_124] : memref<64x512xf32, #tpu.memory_space<vmem>>, vector<8x512xf32>
    %c0_125 = arith.constant 0 : index
    %c0_126 = arith.constant 0 : index
    %240 = vector.load %arg11[%c0_125, %c0_126] : memref<8x128xf32, #tpu.memory_space<vmem>>, vector<8x128xf32>
    %241 = arith.truncf %240 : vector<8x128xf32> to vector<8x128xbf16>
    %c0_127 = arith.constant 0 : index
    %c0_128 = arith.constant 0 : index
    %242 = vector.load %arg9[%c0_127, %c0_128] : memref<128x512xbf16, #tpu.memory_space<vmem>>, vector<128x512xbf16>
    %cst_129 = arith.constant dense<0.000000e+00> : vector<8x512xf32>
    %243 = tpu.matmul %241, %242, %cst_129 {dimension_numbers = #tpu.dot_dimension_numbers<[1], [0], [0], [1], [0, 0, 1, 1], [], []>} : vector<8x128xbf16>, vector<128x512xbf16>, vector<8x512xf32> -> vector<8x512xf32>
    %244 = arith.addf %239, %243 : vector<8x512xf32>
    %245 = vector.extract_strided_slice %244 {offsets = [0, 0], sizes = [8, 128], strides = [1, 1]} : vector<8x512xf32> to vector<8x128xf32>
    %cst_130 = arith.constant 5.000000e-01 : f32
    %246 = vector.broadcast %cst_130 : f32 to vector<8x128xf32>
    %247 = arith.mulf %246, %245 : vector<8x128xf32>
    %248 = math.tanh %247 : vector<8x128xf32>
    %cst_131 = arith.constant 1.000000e+00 : f32
    %249 = vector.broadcast %cst_131 : f32 to vector<8x128xf32>
    %250 = arith.addf %248, %249 : vector<8x128xf32>
    %cst_132 = arith.constant 5.000000e-01 : f32
    %251 = vector.broadcast %cst_132 : f32 to vector<8x128xf32>
    %252 = arith.mulf %251, %250 : vector<8x128xf32>
    %253 = vector.extract_strided_slice %244 {offsets = [0, 128], sizes = [8, 128], strides = [1, 1]} : vector<8x512xf32> to vector<8x128xf32>
    %cst_133 = arith.constant 5.000000e-01 : f32
    %254 = vector.broadcast %cst_133 : f32 to vector<8x128xf32>
    %255 = arith.mulf %254, %253 : vector<8x128xf32>
    %256 = math.tanh %255 : vector<8x128xf32>
    %cst_134 = arith.constant 1.000000e+00 : f32
    %257 = vector.broadcast %cst_134 : f32 to vector<8x128xf32>
    %258 = arith.addf %256, %257 : vector<8x128xf32>
    %cst_135 = arith.constant 5.000000e-01 : f32
    %259 = vector.broadcast %cst_135 : f32 to vector<8x128xf32>
    %260 = arith.mulf %259, %258 : vector<8x128xf32>
    %261 = vector.extract_strided_slice %244 {offsets = [0, 256], sizes = [8, 128], strides = [1, 1]} : vector<8x512xf32> to vector<8x128xf32>
    %262 = math.tanh %261 : vector<8x128xf32>
    %263 = vector.extract_strided_slice %244 {offsets = [0, 384], sizes = [8, 128], strides = [1, 1]} : vector<8x512xf32> to vector<8x128xf32>
    %cst_136 = arith.constant 5.000000e-01 : f32
    %264 = vector.broadcast %cst_136 : f32 to vector<8x128xf32>
    %265 = arith.mulf %264, %263 : vector<8x128xf32>
    %266 = math.tanh %265 : vector<8x128xf32>
    %cst_137 = arith.constant 1.000000e+00 : f32
    %267 = vector.broadcast %cst_137 : f32 to vector<8x128xf32>
    %268 = arith.addf %266, %267 : vector<8x128xf32>
    %cst_138 = arith.constant 5.000000e-01 : f32
    %269 = vector.broadcast %cst_138 : f32 to vector<8x128xf32>
    %270 = arith.mulf %269, %268 : vector<8x128xf32>
    %c0_139 = arith.constant 0 : index
    %c0_140 = arith.constant 0 : index
    %271 = vector.load %arg12[%c0_139, %c0_140] : memref<8x128xf32, #tpu.memory_space<vmem>>, vector<8x128xf32>
    %272 = arith.mulf %260, %271 : vector<8x128xf32>
    %273 = arith.mulf %252, %262 : vector<8x128xf32>
    %274 = arith.addf %272, %273 : vector<8x128xf32>
    %275 = math.tanh %274 : vector<8x128xf32>
    %276 = arith.mulf %270, %275 : vector<8x128xf32>
    %c0_141 = arith.constant 0 : index
    %c0_142 = arith.constant 0 : index
    %277 = vector.load %arg12[%c0_141, %c0_142] : memref<8x128xf32, #tpu.memory_space<vmem>>, vector<8x128xf32>
    tpu.vector_store %arg12[%c0_141, %c0_142], %274 {strides = array<i32>} : memref<8x128xf32, #tpu.memory_space<vmem>>, vector<8x128xf32>,
    %c0_143 = arith.constant 0 : index
    %c0_144 = arith.constant 0 : index
    %278 = vector.load %arg11[%c0_143, %c0_144] : memref<8x128xf32, #tpu.memory_space<vmem>>, vector<8x128xf32>
    tpu.vector_store %arg11[%c0_143, %c0_144], %276 {strides = array<i32>} : memref<8x128xf32, #tpu.memory_space<vmem>>, vector<8x128xf32>,
    %279 = arith.index_cast %237 : i32 to index
    %c0_145 = arith.constant 0 : index
    %280 = vector.load %arg7[%279, %c0_145] : memref<64x128xf32, #tpu.memory_space<vmem>>, vector<8x128xf32>
    tpu.vector_store %arg7[%279, %c0_145], %276 {strides = array<i32>} : memref<64x128xf32, #tpu.memory_space<vmem>>, vector<8x128xf32>,
    %c6_i32 = arith.constant 6 : i32
    %c8_i32_146 = arith.constant 8 : i32
    %281 = arith.muli %c6_i32, %c8_i32_146 : i32
    %282 = tpu.assume_multiple %281, 8 : i32
    %283 = arith.index_cast %282 : i32 to index
    %c0_147 = arith.constant 0 : index
    %284 = vector.load %arg10[%283, %c0_147] : memref<64x512xf32, #tpu.memory_space<vmem>>, vector<8x512xf32>
    %c0_148 = arith.constant 0 : index
    %c0_149 = arith.constant 0 : index
    %285 = vector.load %arg11[%c0_148, %c0_149] : memref<8x128xf32, #tpu.memory_space<vmem>>, vector<8x128xf32>
    %286 = arith.truncf %285 : vector<8x128xf32> to vector<8x128xbf16>
    %c0_150 = arith.constant 0 : index
    %c0_151 = arith.constant 0 : index
    %287 = vector.load %arg9[%c0_150, %c0_151] : memref<128x512xbf16, #tpu.memory_space<vmem>>, vector<128x512xbf16>
    %cst_152 = arith.constant dense<0.000000e+00> : vector<8x512xf32>
    %288 = tpu.matmul %286, %287, %cst_152 {dimension_numbers = #tpu.dot_dimension_numbers<[1], [0], [0], [1], [0, 0, 1, 1], [], []>} : vector<8x128xbf16>, vector<128x512xbf16>, vector<8x512xf32> -> vector<8x512xf32>
    %289 = arith.addf %284, %288 : vector<8x512xf32>
    %290 = vector.extract_strided_slice %289 {offsets = [0, 0], sizes = [8, 128], strides = [1, 1]} : vector<8x512xf32> to vector<8x128xf32>
    %cst_153 = arith.constant 5.000000e-01 : f32
    %291 = vector.broadcast %cst_153 : f32 to vector<8x128xf32>
    %292 = arith.mulf %291, %290 : vector<8x128xf32>
    %293 = math.tanh %292 : vector<8x128xf32>
    %cst_154 = arith.constant 1.000000e+00 : f32
    %294 = vector.broadcast %cst_154 : f32 to vector<8x128xf32>
    %295 = arith.addf %293, %294 : vector<8x128xf32>
    %cst_155 = arith.constant 5.000000e-01 : f32
    %296 = vector.broadcast %cst_155 : f32 to vector<8x128xf32>
    %297 = arith.mulf %296, %295 : vector<8x128xf32>
    %298 = vector.extract_strided_slice %289 {offsets = [0, 128], sizes = [8, 128], strides = [1, 1]} : vector<8x512xf32> to vector<8x128xf32>
    %cst_156 = arith.constant 5.000000e-01 : f32
    %299 = vector.broadcast %cst_156 : f32 to vector<8x128xf32>
    %300 = arith.mulf %299, %298 : vector<8x128xf32>
    %301 = math.tanh %300 : vector<8x128xf32>
    %cst_157 = arith.constant 1.000000e+00 : f32
    %302 = vector.broadcast %cst_157 : f32 to vector<8x128xf32>
    %303 = arith.addf %301, %302 : vector<8x128xf32>
    %cst_158 = arith.constant 5.000000e-01 : f32
    %304 = vector.broadcast %cst_158 : f32 to vector<8x128xf32>
    %305 = arith.mulf %304, %303 : vector<8x128xf32>
    %306 = vector.extract_strided_slice %289 {offsets = [0, 256], sizes = [8, 128], strides = [1, 1]} : vector<8x512xf32> to vector<8x128xf32>
    %307 = math.tanh %306 : vector<8x128xf32>
    %308 = vector.extract_strided_slice %289 {offsets = [0, 384], sizes = [8, 128], strides = [1, 1]} : vector<8x512xf32> to vector<8x128xf32>
    %cst_159 = arith.constant 5.000000e-01 : f32
    %309 = vector.broadcast %cst_159 : f32 to vector<8x128xf32>
    %310 = arith.mulf %309, %308 : vector<8x128xf32>
    %311 = math.tanh %310 : vector<8x128xf32>
    %cst_160 = arith.constant 1.000000e+00 : f32
    %312 = vector.broadcast %cst_160 : f32 to vector<8x128xf32>
    %313 = arith.addf %311, %312 : vector<8x128xf32>
    %cst_161 = arith.constant 5.000000e-01 : f32
    %314 = vector.broadcast %cst_161 : f32 to vector<8x128xf32>
    %315 = arith.mulf %314, %313 : vector<8x128xf32>
    %c0_162 = arith.constant 0 : index
    %c0_163 = arith.constant 0 : index
    %316 = vector.load %arg12[%c0_162, %c0_163] : memref<8x128xf32, #tpu.memory_space<vmem>>, vector<8x128xf32>
    %317 = arith.mulf %305, %316 : vector<8x128xf32>
    %318 = arith.mulf %297, %307 : vector<8x128xf32>
    %319 = arith.addf %317, %318 : vector<8x128xf32>
    %320 = math.tanh %319 : vector<8x128xf32>
    %321 = arith.mulf %315, %320 : vector<8x128xf32>
    %c0_164 = arith.constant 0 : index
    %c0_165 = arith.constant 0 : index
    %322 = vector.load %arg12[%c0_164, %c0_165] : memref<8x128xf32, #tpu.memory_space<vmem>>, vector<8x128xf32>
    tpu.vector_store %arg12[%c0_164, %c0_165], %319 {strides = array<i32>} : memref<8x128xf32, #tpu.memory_space<vmem>>, vector<8x128xf32>,
    %c0_166 = arith.constant 0 : index
    %c0_167 = arith.constant 0 : index
    %323 = vector.load %arg11[%c0_166, %c0_167] : memref<8x128xf32, #tpu.memory_space<vmem>>, vector<8x128xf32>
    tpu.vector_store %arg11[%c0_166, %c0_167], %321 {strides = array<i32>} : memref<8x128xf32, #tpu.memory_space<vmem>>, vector<8x128xf32>,
    %324 = arith.index_cast %282 : i32 to index
    %c0_168 = arith.constant 0 : index
    %325 = vector.load %arg7[%324, %c0_168] : memref<64x128xf32, #tpu.memory_space<vmem>>, vector<8x128xf32>
    tpu.vector_store %arg7[%324, %c0_168], %321 {strides = array<i32>} : memref<64x128xf32, #tpu.memory_space<vmem>>, vector<8x128xf32>,
    %c7_i32 = arith.constant 7 : i32
    %c8_i32_169 = arith.constant 8 : i32
    %326 = arith.muli %c7_i32, %c8_i32_169 : i32
    %327 = tpu.assume_multiple %326, 8 : i32
    %328 = arith.index_cast %327 : i32 to index
    %c0_170 = arith.constant 0 : index
    %329 = vector.load %arg10[%328, %c0_170] : memref<64x512xf32, #tpu.memory_space<vmem>>, vector<8x512xf32>
    %c0_171 = arith.constant 0 : index
    %c0_172 = arith.constant 0 : index
    %330 = vector.load %arg11[%c0_171, %c0_172] : memref<8x128xf32, #tpu.memory_space<vmem>>, vector<8x128xf32>
    %331 = arith.truncf %330 : vector<8x128xf32> to vector<8x128xbf16>
    %c0_173 = arith.constant 0 : index
    %c0_174 = arith.constant 0 : index
    %332 = vector.load %arg9[%c0_173, %c0_174] : memref<128x512xbf16, #tpu.memory_space<vmem>>, vector<128x512xbf16>
    %cst_175 = arith.constant dense<0.000000e+00> : vector<8x512xf32>
    %333 = tpu.matmul %331, %332, %cst_175 {dimension_numbers = #tpu.dot_dimension_numbers<[1], [0], [0], [1], [0, 0, 1, 1], [], []>} : vector<8x128xbf16>, vector<128x512xbf16>, vector<8x512xf32> -> vector<8x512xf32>
    %334 = arith.addf %329, %333 : vector<8x512xf32>
    %335 = vector.extract_strided_slice %334 {offsets = [0, 0], sizes = [8, 128], strides = [1, 1]} : vector<8x512xf32> to vector<8x128xf32>
    %cst_176 = arith.constant 5.000000e-01 : f32
    %336 = vector.broadcast %cst_176 : f32 to vector<8x128xf32>
    %337 = arith.mulf %336, %335 : vector<8x128xf32>
    %338 = math.tanh %337 : vector<8x128xf32>
    %cst_177 = arith.constant 1.000000e+00 : f32
    %339 = vector.broadcast %cst_177 : f32 to vector<8x128xf32>
    %340 = arith.addf %338, %339 : vector<8x128xf32>
    %cst_178 = arith.constant 5.000000e-01 : f32
    %341 = vector.broadcast %cst_178 : f32 to vector<8x128xf32>
    %342 = arith.mulf %341, %340 : vector<8x128xf32>
    %343 = vector.extract_strided_slice %334 {offsets = [0, 128], sizes = [8, 128], strides = [1, 1]} : vector<8x512xf32> to vector<8x128xf32>
    %cst_179 = arith.constant 5.000000e-01 : f32
    %344 = vector.broadcast %cst_179 : f32 to vector<8x128xf32>
    %345 = arith.mulf %344, %343 : vector<8x128xf32>
    %346 = math.tanh %345 : vector<8x128xf32>
    %cst_180 = arith.constant 1.000000e+00 : f32
    %347 = vector.broadcast %cst_180 : f32 to vector<8x128xf32>
    %348 = arith.addf %346, %347 : vector<8x128xf32>
    %cst_181 = arith.constant 5.000000e-01 : f32
    %349 = vector.broadcast %cst_181 : f32 to vector<8x128xf32>
    %350 = arith.mulf %349, %348 : vector<8x128xf32>
    %351 = vector.extract_strided_slice %334 {offsets = [0, 256], sizes = [8, 128], strides = [1, 1]} : vector<8x512xf32> to vector<8x128xf32>
    %352 = math.tanh %351 : vector<8x128xf32>
    %353 = vector.extract_strided_slice %334 {offsets = [0, 384], sizes = [8, 128], strides = [1, 1]} : vector<8x512xf32> to vector<8x128xf32>
    %cst_182 = arith.constant 5.000000e-01 : f32
    %354 = vector.broadcast %cst_182 : f32 to vector<8x128xf32>
    %355 = arith.mulf %354, %353 : vector<8x128xf32>
    %356 = math.tanh %355 : vector<8x128xf32>
    %cst_183 = arith.constant 1.000000e+00 : f32
    %357 = vector.broadcast %cst_183 : f32 to vector<8x128xf32>
    %358 = arith.addf %356, %357 : vector<8x128xf32>
    %cst_184 = arith.constant 5.000000e-01 : f32
    %359 = vector.broadcast %cst_184 : f32 to vector<8x128xf32>
    %360 = arith.mulf %359, %358 : vector<8x128xf32>
    %c0_185 = arith.constant 0 : index
    %c0_186 = arith.constant 0 : index
    %361 = vector.load %arg12[%c0_185, %c0_186] : memref<8x128xf32, #tpu.memory_space<vmem>>, vector<8x128xf32>
    %362 = arith.mulf %350, %361 : vector<8x128xf32>
    %363 = arith.mulf %342, %352 : vector<8x128xf32>
    %364 = arith.addf %362, %363 : vector<8x128xf32>
    %365 = math.tanh %364 : vector<8x128xf32>
    %366 = arith.mulf %360, %365 : vector<8x128xf32>
    %c0_187 = arith.constant 0 : index
    %c0_188 = arith.constant 0 : index
    %367 = vector.load %arg12[%c0_187, %c0_188] : memref<8x128xf32, #tpu.memory_space<vmem>>, vector<8x128xf32>
    tpu.vector_store %arg12[%c0_187, %c0_188], %364 {strides = array<i32>} : memref<8x128xf32, #tpu.memory_space<vmem>>, vector<8x128xf32>,
    %c0_189 = arith.constant 0 : index
    %c0_190 = arith.constant 0 : index
    %368 = vector.load %arg11[%c0_189, %c0_190] : memref<8x128xf32, #tpu.memory_space<vmem>>, vector<8x128xf32>
    tpu.vector_store %arg11[%c0_189, %c0_190], %366 {strides = array<i32>} : memref<8x128xf32, #tpu.memory_space<vmem>>, vector<8x128xf32>,
    %369 = arith.index_cast %327 : i32 to index
    %c0_191 = arith.constant 0 : index
    %370 = vector.load %arg7[%369, %c0_191] : memref<64x128xf32, #tpu.memory_space<vmem>>, vector<8x128xf32>
    tpu.vector_store %arg7[%369, %c0_191], %366 {strides = array<i32>} : memref<64x128xf32, #tpu.memory_space<vmem>>, vector<8x128xf32>,
    %c8_i32_192 = arith.constant 8 : i32
    return
  }
  func.func @transform_0(%arg0: i32) -> (i32, i32) {
    %c0_i32 = arith.constant 0 : i32
    %c0_i32_0 = arith.constant 0 : i32
    return %arg0, %c0_i32 : i32, i32
  }
  func.func @transform_3(%arg0: i32) -> (i32, i32) {
    %c0_i32 = arith.constant 0 : i32
    %c0_i32_0 = arith.constant 0 : i32
    %c0_i32_1 = arith.constant 0 : i32
    return %c0_i32, %c0_i32_0 : i32, i32
  }
  func.func @transform_4(%arg0: i32) -> (i32, i32) {
    %c0_i32 = arith.constant 0 : i32
    %c0_i32_0 = arith.constant 0 : i32
    %c0_i32_1 = arith.constant 0 : i32
    return %c0_i32, %c0_i32_0 : i32, i32
  }
  func.func @transform_5(%arg0: i32) -> (i32, i32) {
    %c0_i32 = arith.constant 0 : i32
    %c0_i32_0 = arith.constant 0 : i32
    %c0_i32_1 = arith.constant 0 : i32
    return %c0_i32, %c0_i32_0 : i32, i32
  }
  func.func @transform_6(%arg0: i32) -> (i32, i32) {
    %c0_i32 = arith.constant 0 : i32
    %c0_i32_0 = arith.constant 0 : i32
    return %arg0, %c0_i32 : i32, i32
  }
}

</mosaic_0001>

<bundles_post_ra>
// kernel: tpu_custom_call.1
= control target key start
LH: loop header
LB: loop body
LE: loop exit
PB: predicated region body
PF: predicated region fallthrough
CT: control target
= control target key end

     0   :  { %11 = vsyncpa [#allocation9], 0  ;;  %s2448_s0 = inlined_call_operand.hbm [shape: f32[64,128], index: 0, kind: input, shape index: {}]   ;;  %s2449_s1 = inlined_call_operand.hbm [shape: bf16[128,512], index: 1, kind: input, shape index: {}]   ;;  %s2450_s2 = inlined_call_operand.hbm [shape: bf16[128,512], index: 2, kind: input, shape index: {}]   ;;  %s2451_s3 = inlined_call_operand.hbm [shape: f32[1,512], index: 3, kind: input, shape index: {}]   ;;  %s2452_s4 = inlined_call_operand.vmem [shape: f32[8,128], index: 4, kind: input, shape index: {}]   ;;  %s2453_s5 = inlined_call_operand.vmem [shape: f32[8,128], index: 5, kind: input, shape index: {}]   ;;  %s2454_s6 = inlined_call_operand.hbm [shape: f32[64,128], index: 6, kind: output, shape index: {}]  }
   0x1   :  { %12 = vsyncpa [#allocation12], 0 }
   0x2   :  { %13 = vsyncpa [#allocation10], 0  ;;  %s1792_s21 = smov [#allocation8]   ;;  %s1716_s25 = scalar_lea.hbm %s2448_s0, 1024 }
   0x3   :  { %s19_s22 = sshll.u32 %s1792_s21, 4  ;;  %p1717_p0 = scmp.ne.s32.totalorder %s2448_s0, %s1716_s25  ;;  %s20_s22 = int_to_ptr.vmem [resolvable:$true] %s19_s22 }
   0x4   :  { %p1720_p1 = scmp.lt.u32.totalorder %s1716_s25, %s2448_s0 }
   0x6   :  { %p1722_p2 = pnand %p1720_p1, %p1717_p0 }
   0x8   :  { %1725 = shalt.err (!%p1722_p2)
}
   0x9   :  { %s1726_s30 = scalar_lea.vmem %s20_s22, 1024  ;;  %p1731_p4 = scmp.lt.s32.totalorder %s20_s22, %s20_s22 }
   0xa   :  { %p1727_p3 = scmp.ne.s32.totalorder %s20_s22, %s1726_s30  ;;  %p1732_p5 = scmp.lt.s32.totalorder %s1726_s30, %s1726_s30 }
   0xc   :  { %p1733_p6 = por %p1732_p5, %p1731_p4 }
   0xe   :  { %p1734_p7 = pnand %p1733_p6, %p1727_p3 }
  0x10   :  { %1737 = shalt.err (!%p1734_p7)
}
  0x11   :  { %s1793_s7 = smov 128   ;;  %s1794_s8 = smov 8  }
  0x12   :  { %25 = dma.hbm_to_vmem [thread:$0]  %s2448_s0, 1024, %s20_s22, [#allocation9], %s1793_s7, %s1793_s7, %s1794_s8  }
  0x13   :  { %s1795_s11 = smov [#allocation11]   ;;  %s1738_s15 = scalar_lea.hbm %s2451_s3, 64 }
  0x14   :  { %s32_s12 = sshll.u32 %s1795_s11, 4  ;;  %p1739_p8 = scmp.ne.s32.totalorder %s2451_s3, %s1738_s15  ;;  %s33_s12 = int_to_ptr.vmem [resolvable:$true] %s32_s12 }
  0x15   :  { %p1742_p9 = scmp.lt.u32.totalorder %s1738_s15, %s2451_s3 }
  0x17   :  { %p1744_p10 = pnand %p1742_p9, %p1739_p8 }
  0x19   :  { %1747 = shalt.err (!%p1744_p10)
}
  0x1a   :  { %s1748_s20 = scalar_lea.vmem %s33_s12, 64  ;;  %p1753_p12 = scmp.lt.s32.totalorder %s33_s12, %s33_s12 }
  0x1b   :  { %p1749_p11 = scmp.ne.s32.totalorder %s33_s12, %s1748_s20  ;;  %p1754_p13 = scmp.lt.s32.totalorder %s1748_s20, %s1748_s20 }
  0x1d   :  { %p1755_p0 = por %p1754_p13, %p1753_p12 }
  0x1f   :  { %p1756_p1 = pnand %p1755_p0, %p1749_p11 }
  0x21   :  { %1759 = shalt.err (!%p1756_p1)
}
  0x22   :  { %35 = dma.hbm_to_vmem [thread:$0]  %s2451_s3, 64, %s33_s12, [#allocation12]  }
  0x23   :  { %1782 = dma.done.wait [#allocation9], 1024  }
  0x24   :  { %1783 = vsyncadd [#allocation9], 4294966272 }
  0x25   :  { %1784 = dma.done.wait [#allocation12], 64  }
  0x26   :  { %1785 = vsyncadd [#allocation12], 4294967232 }
  0x27   :  { %s55_s22 = sld [smem:[#allocation0]]   ;;  %s1796_s23 = smov [#allocation2]  }
  0x28   :  { %s63_s24 = sshll.u32 %s1796_s23, 4  ;;  %s1797_s25 = smov 512   ;;  %s64_s24 = int_to_ptr.vmem [resolvable:$true] %s63_s24 }
  0x29   :  { %67 = sst [smem:[#allocation15]] %s1797_s25  ;;  %s1798_s26 = smov 4  }
  0x2a   :  { %69 = sst [smem:[#allocation15 + $0x1]] %s1797_s25  ;;  %s1799_s27 = smov 64  }
  0x2b   :  { %71 = sst [smem:[#allocation15 + $0x2]] %s1798_s26  ;;  %s1800_s29 = smov 128  }
  0x2c   :  { %73 = sst [smem:[#allocation15 + $0x3]] %s1799_s27  ;;  %s1801_s3 = smov 2  }
  0x2d   :  { %s1612_s28 = sshll.u32 %s55_s22, 26  ;;  %75 = sst [smem:[#allocation15 + $0x4]] %s1800_s29 }
  0x2e   :  { %s1613_s30 = sadd.s32 134217728, %s1612_s28  ;;  %77 = sst [smem:[#allocation15 + $0x5]] %s1801_s3 }
  0x2f   :  { %s1802_s9 = smov 256   ;;  %81 = sst [smem:[#allocation15 + $0x7]] %s1799_s27 }
  0x30   :  { %79 = sst [smem:[#allocation15 + $0x6]] %s1802_s9  ;;  %s1803_s10 = smov [#allocation7]  }
  0x31   :  { %83 = sst [smem:[#allocation15 + $0x8]] %s1798_s26  ;;  %s1804_s11 = smov [#allocation14]  }
  0x32   :  { %85 = dma.general %s2449_s1, 4096, %s64_s24, %s1803_s10, %s1804_s11, [#allocation15], %s1613_s30, 0  }
  0x33   :  { %102 = sst [smem:[#allocation17]] %s1797_s25  ;;  %s1805_s14 = smov [#allocation3]  }
  0x34   :  { %104 = sst [smem:[#allocation17 + $0x1]] %s1797_s25  ;;  %s98_s15 = sshll.u32 %s1805_s14, 4  ;;  %s99_s15 = int_to_ptr.vmem [resolvable:$true] %s98_s15 }
  0x35   :  { %106 = sst [smem:[#allocation17 + $0x2]] %s1798_s26  ;;  %s1806_s16 = smov [#allocation7 + $0x1]  }
  0x36   :  { %108 = sst [smem:[#allocation17 + $0x3]] %s1799_s27  ;;  %s1807_s17 = smov [#allocation16]  }
  0x37   :  { %110 = sst [smem:[#allocation17 + $0x4]] %s1800_s29 }
  0x38   :  { %112 = sst [smem:[#allocation17 + $0x5]] %s1801_s3 }
  0x39   :  { %114 = sst [smem:[#allocation17 + $0x6]] %s1802_s9 }
  0x3a   :  { %116 = sst [smem:[#allocation17 + $0x7]] %s1799_s27 }
  0x3b   :  { %118 = sst [smem:[#allocation17 + $0x8]] %s1798_s26 }
  0x3c   :  { %120 = dma.general %s2450_s2, 4096, %s99_s15, %s1806_s16, %s1807_s17, [#allocation17], %s1613_s30, 0  }
  0x3d   :  { %1786 = dma.done.wait [#allocation7], 4096 }
  0x3e   :  { %1787 = vsyncadd [#allocation7], 4294963200 }
  0x3f   :  { %1788 = dma.done.wait [#allocation7 + $0x1], 4096 }
  0x40   :  { %1789 = vsyncadd [#allocation7 + $0x1], 4294963200  ;;  %v1881_v0 = vld [vmem:[%s2452_s4] sm:$0xff]  ;;  %v144_v2 = vld [vmem:[#allocation2 + $0x8] sm:$0xff]  ;;  %v2455_v12 = vmov 0   ;;  %s1809_s2 = smov [#allocation13]  }
  0x41   :  { %v1886_v1 = vld [vmem:[%s2453_s5] sm:$0xff]  ;;  %v146_v3 = vld [vmem:[#allocation2 + $0x18] sm:$0xff]  ;;  %197 = vmatprep.subr.bf16.mxu0 %v144_v2  ;;  %v145_v5 = vld [vmem:[#allocation2 + $0x10] sm:$0xff]  ;;  %229 = vmatprep.mubr.bf16.mxu0 %v2455_v12  ;;  %s1579_s4 = sshll.u32 %s1809_s2, 4  ;;  %s1580_s4 = int_to_ptr.vmem [resolvable:$true] %s1579_s4 }
  0x42   :  { %v143_v4 = vld [vmem:[#allocation2] sm:$0xff]  ;;  %270 = vmatprep.subr.bf16.mxu1 %v146_v3  ;;  %v148_v6 = vld [vmem:[#allocation2 + $0x28] sm:$0xff]  ;;  %v150_v7 = vld [vmem:[#allocation2 + $0x38] sm:$0xff]  ;;  %302 = vmatprep.mubr.bf16.mxu1 %v2455_v12  ;;  %s1760_s5 = scalar_lea.vmem %s1580_s4, 1024  ;;  %p1765_p3 = scmp.lt.s32.totalorder %s1580_s4, %s1580_s4 }
  0x43   :  { %198 = vmatpush1.bf16.msra.mxu0 %v143_v4  ;;  %271 = vmatpush1.bf16.msra.mxu1 %v145_v5  ;;  %v147_v8 = vld [vmem:[#allocation2 + $0x20] sm:$0xff]  ;;  %v149_v9 = vld [vmem:[#allocation2 + $0x30] sm:$0xff]  ;;  %v152_v10 = vld [vmem:[#allocation2 + $0x48] sm:$0xff]  ;;  %p1761_p2 = scmp.ne.s32.totalorder %s1580_s4, %s1760_s5  ;;  %p1766_p4 = scmp.lt.s32.totalorder %s1760_s5, %s1760_s5 }
  0x44   :  { %199 = vmatprep.subr.bf16.mxu0 %v148_v6  ;;  %272 = vmatprep.subr.bf16.mxu1 %v150_v7  ;;  %v154_v11 = vld [vmem:[#allocation2 + $0x58] sm:$0xff]  ;;  %v151_v13 = vld [vmem:[#allocation2 + $0x40] sm:$0xff]  ;;  %v153_v14 = vld [vmem:[#allocation2 + $0x50] sm:$0xff] }
  0x45   :  { %v156_v15 = vld [vmem:[#allocation2 + $0x68] sm:$0xff]  ;;  %v158_v16 = vld [vmem:[#allocation2 + $0x78] sm:$0xff]  ;;  %v155_v17 = vld [vmem:[#allocation2 + $0x60] sm:$0xff]  ;;  %p1767_p5 = por %p1766_p4, %p1765_p3 }
  0x46   :  { %v157_v18 = vld [vmem:[#allocation2 + $0x70] sm:$0xff]  ;;  %v160_v19 = vld [vmem:[#allocation2 + $0x88] sm:$0xff]  ;;  %v162_v20 = vld [vmem:[#allocation2 + $0x98] sm:$0xff] }
  0x47   :  { %200 = vmatpush1.bf16.msra.mxu0 %v147_v8  ;;  %273 = vmatpush1.bf16.msra.mxu1 %v149_v9  ;;  %v159_v21 = vld [vmem:[#allocation2 + $0x80] sm:$0xff]  ;;  %v161_v22 = vld [vmem:[#allocation2 + $0x90] sm:$0xff]  ;;  %v164_v23 = vld [vmem:[#allocation2 + $0xa8] sm:$0xff]  ;;  %p1768_p6 = pnand %p1767_p5, %p1761_p2 }
  0x48   :  { %201 = vmatprep.subr.bf16.mxu0 %v152_v10  ;;  %274 = vmatprep.subr.bf16.mxu1 %v154_v11  ;;  %v166_v24 = vld [vmem:[#allocation2 + $0xb8] sm:$0xff]  ;;  %v163_v25 = vld [vmem:[#allocation2 + $0xa0] sm:$0xff]  ;;  %v165_v26 = vld [vmem:[#allocation2 + $0xb0] sm:$0xff] }
  0x49   :  { %v168_v27 = vld [vmem:[#allocation2 + $0xc8] sm:$0xff]  ;;  %v170_v28 = vld [vmem:[#allocation2 + $0xd8] sm:$0xff]  ;;  %v167_v29 = vld [vmem:[#allocation2 + $0xc0] sm:$0xff] }
  0x4a   :  { %v169_v30 = vld [vmem:[#allocation2 + $0xd0] sm:$0xff]  ;;  %v172_v31 = vld [vmem:[#allocation2 + $0xe8] sm:$0xff]  ;;  %v174_v32 = vld [vmem:[#allocation2 + $0xf8] sm:$0xff] }
  0x4b   :  { %202 = vmatpush1.bf16.msra.mxu0 %v151_v13  ;;  %275 = vmatpush1.bf16.msra.mxu1 %v153_v14  ;;  %v131_v33 = vld [vmem:[#allocation8] sm:$0xff]  ;;  %v132_v34 = vld [vmem:[#allocation8 + $0x8] sm:$0xff]  ;;  %v173_v36 = vld [vmem:[#allocation2 + $0xf0] sm:$0xff] }
  0x4c   :  { %203 = vmatprep.subr.bf16.mxu0 %v156_v15  ;;  %276 = vmatprep.subr.bf16.mxu1 %v158_v16  ;;  %v171_v35 = vld [vmem:[#allocation2 + $0xe0] sm:$0xff]  ;;  %v1890_v37 = vld [vmem:[#allocation3 + $0x8] sm:$0xff]  ;;  %v1892_v38 = vld [vmem:[#allocation3 + $0x18] sm:$0xff]  ;;  %v139_v39 = vpack.c.bf16 %v132_v34, %v131_v33 }
  0x4d   :  { %v1896_v40 = vld [vmem:[#allocation3] sm:$0xff]  ;;  %v1898_v41 = vld [vmem:[#allocation3 + $0x10] sm:$0xff]  ;;  %v1900_v42 = vld [vmem:[#allocation3 + $0x28] sm:$0xff] }
  0x4e   :  { %v1902_v43 = vld [vmem:[#allocation3 + $0x38] sm:$0xff]  ;;  %v133_v44 = vld [vmem:[#allocation8 + $0x10] sm:$0xff]  ;;  %v1908_v46 = vld [vmem:[#allocation3 + $0x20] sm:$0xff] }
  0x4f   :  { %204 = vmatpush1.bf16.msra.mxu0 %v155_v17  ;;  %277 = vmatpush1.bf16.msra.mxu1 %v157_v18  ;;  %v134_v45 = vld [vmem:[#allocation8 + $0x18] sm:$0xff]  ;;  %v1910_v47 = vld [vmem:[#allocation3 + $0x30] sm:$0xff]  ;;  %v1914_v48 = vld [vmem:[#allocation3 + $0x48] sm:$0xff]  ;;  %v383_v18 = vpack.c.bf16 %v1881_v0, %v1881_v0  ;;  %v177_v0 = vlaneseq }
  0x50   :  { %205 = vmatprep.subr.bf16.mxu0 %v160_v19  ;;  %278 = vmatprep.subr.bf16.mxu1 %v162_v20  ;;  %v1916_v49 = vld [vmem:[#allocation3 + $0x58] sm:$0xff]  ;;  %v140_v50 = vpack.c.bf16 %v134_v45, %v133_v44  ;;  %v1922_v51 = vld [vmem:[#allocation3 + $0x40] sm:$0xff]  ;;  %v1924_v52 = vld [vmem:[#allocation3 + $0x50] sm:$0xff] }
  0x51   :  { %v1926_v53 = vld [vmem:[#allocation3 + $0x68] sm:$0xff]  ;;  %v1928_v54 = vld [vmem:[#allocation3 + $0x78] sm:$0xff]  ;;  %v135_v55 = vld [vmem:[#allocation8 + $0x20] sm:$0xff]  ;;  %v178_v19 = vshrl.u32 %v177_v0, 7 }
  0x52   :  { %v136_v56 = vld [vmem:[#allocation8 + $0x28] sm:$0xff]  ;;  %v1934_v57 = vld [vmem:[#allocation3 + $0x60] sm:$0xff]  ;;  %v1936_v58 = vld [vmem:[#allocation3 + $0x70] sm:$0xff] }
  0x53   :  { %206 = vmatpush1.bf16.msra.mxu0 %v159_v21  ;;  %279 = vmatpush1.bf16.msra.mxu1 %v161_v22  ;;  %v1940_v59 = vld [vmem:[#allocation3 + $0x88] sm:$0xff]  ;;  %v1942_v60 = vld [vmem:[#allocation3 + $0x98] sm:$0xff]  ;;  %v141_v61 = vpack.c.bf16 %v136_v56, %v135_v55  ;;  %v1948_v62 = vld [vmem:[#allocation3 + $0x80] sm:$0xff]  ;;  %v187_v20 = vsub.s32 2, %v178_v19  ;;  %v191_v21 = vsub.s32 3, %v178_v19  ;;  %v179_v22 = vsub.s32 0, %v178_v19 }
  0x54   :  { %207 = vmatprep.subr.bf16.mxu0 %v164_v23  ;;  %280 = vmatprep.subr.bf16.mxu1 %v166_v24  ;;  %v1950_v63 = vld [vmem:[#allocation3 + $0x90] sm:$0xff]  ;;  %v1952_v2 = vld [vmem:[#allocation3 + $0xa8] sm:$0xff]  ;;  %v1954_v3 = vld [vmem:[#allocation3 + $0xb8] sm:$0xff]  ;;  %v183_v24 = vsub.s32 1, %v178_v19 }
  0x55   :  { %v137_v4 = vld [vmem:[#allocation8 + $0x30] sm:$0xff]  ;;  %v138_v5 = vld [vmem:[#allocation8 + $0x38] sm:$0xff]  ;;  %v1960_v6 = vld [vmem:[#allocation3 + $0xa0] sm:$0xff] }
  0x56   :  { %v1962_v7 = vld [vmem:[#allocation3 + $0xb0] sm:$0xff]  ;;  %v1966_v8 = vld [vmem:[#allocation3 + $0xc8] sm:$0xff]  ;;  %v1968_v9 = vld [vmem:[#allocation3 + $0xd8] sm:$0xff]  ;;  %v142_v10 = vpack.c.bf16 %v138_v5, %v137_v4 }
  0x57   :  { %208 = vmatpush1.bf16.msra.mxu0 %v163_v25  ;;  %281 = vmatpush1.bf16.msra.mxu1 %v165_v26  ;;  %v1974_v11 = vld [vmem:[#allocation3 + $0xc0] sm:$0xff]  ;;  %v1976_v13 = vld [vmem:[#allocation3 + $0xd0] sm:$0xff]  ;;  %v1978_v14 = vld [vmem:[#allocation3 + $0xe8] sm:$0xff] }
  0x58   :  { %209 = vmatprep.subr.bf16.mxu0 %v168_v27  ;;  %282 = vmatprep.subr.bf16.mxu1 %v170_v28  ;;  %v1980_v15 = vld [vmem:[#allocation3 + $0xf8] sm:$0xff]  ;;  %v1986_v16 = vld [vmem:[#allocation3 + $0xe0] sm:$0xff]  ;;  %v1988_v17 = vld [vmem:[#allocation3 + $0xf0] sm:$0xff] }
  0x59   :  { %v175_v23 = vld [vmem:[#allocation11] sm:$0xf] }
  0x5a   :  { %v2032_v25 = vrot.slane %v175_v23, %v187_v20  ;;  %v2038_v28 = vrot.slane %v175_v23, %v191_v21 }
  0x5b   :  { %210 = vmatpush1.bf16.msra.mxu0 %v167_v29  ;;  %283 = vmatpush1.bf16.msra.mxu1 %v169_v30  ;;  %v180_v29 = vrot.slane %v175_v23, %v179_v22 }
  0x5c   :  { %211 = vmatprep.subr.bf16.mxu0 %v172_v31  ;;  %284 = vmatprep.subr.bf16.mxu1 %v174_v32  ;;  %v184_v32 = vrot.slane %v175_v23, %v183_v24 }
  0x5f   :  { %212 = vmatpush1.bf16.msra.mxu0 %v171_v35  ;;  %285 = vmatpush1.bf16.msra.mxu1 %v173_v36 }
  0x60   :  { %416 = vmatprep.subr.bf16.mxu0 %v1890_v37  ;;  %457 = vmatprep.subr.bf16.mxu1 %v1892_v38 }
  0x62   :  { %230 = vmatmul.mubr.bf16.vlgmr.msra.gmra.mrb[0].mxu0 %v139_v39  ;;  %303 = vmatmul.mubr.bf16.vlgmr.msra.gmra.mrb[0].mxu1 %v139_v39 }
  0x63   :  { %417 = vmatpush1.bf16.msra.mxu0 %v1896_v40  ;;  %458 = vmatpush1.bf16.msra.mxu1 %v1898_v41 }
  0x64   :  { %418 = vmatprep.subr.bf16.mxu0 %v1900_v42  ;;  %459 = vmatprep.subr.bf16.mxu1 %v1902_v43 }
  0x65   :  { %239 = vmatprep.mubr.bf16.mxu0 %v2455_v12  ;;  %312 = vmatprep.mubr.bf16.mxu1 %v2455_v12 }
  0x67   :  { %419 = vmatpush1.bf16.msra.mxu0 %v1908_v46  ;;  %460 = vmatpush1.bf16.msra.mxu1 %v1910_v47 }
  0x68   :  { %420 = vmatprep.subr.bf16.mxu0 %v1914_v48  ;;  %461 = vmatprep.subr.bf16.mxu1 %v1916_v49 }
  0x6a   :  { %240 = vmatmul.mubr.bf16.gmra.mrb[4].mxu0 %v140_v50  ;;  %313 = vmatmul.mubr.bf16.gmra.mrb[4].mxu1 %v140_v50 }
  0x6b   :  { %421 = vmatpush1.bf16.msra.mxu0 %v1922_v51  ;;  %462 = vmatpush1.bf16.msra.mxu1 %v1924_v52 }
  0x6c   :  { %422 = vmatprep.subr.bf16.mxu0 %v1926_v53  ;;  %463 = vmatprep.subr.bf16.mxu1 %v1928_v54 }
  0x6d   :  { %249 = vmatprep.mubr.bf16.mxu0 %v2455_v12  ;;  %322 = vmatprep.mubr.bf16.mxu1 %v2455_v12 }
  0x6f   :  { %423 = vmatpush1.bf16.msra.mxu0 %v1934_v57  ;;  %464 = vmatpush1.bf16.msra.mxu1 %v1936_v58 }
  0x70   :  { %424 = vmatprep.subr.bf16.mxu0 %v1940_v59  ;;  %465 = vmatprep.subr.bf16.mxu1 %v1942_v60 }
  0x72   :  { %250 = vmatmul.mubr.bf16.gmra.mrb[8].mxu0 %v141_v61  ;;  %323 = vmatmul.mubr.bf16.gmra.mrb[8].mxu1 %v141_v61 }
  0x73   :  { %425 = vmatpush1.bf16.msra.mxu0 %v1948_v62  ;;  %466 = vmatpush1.bf16.msra.mxu1 %v1950_v63 }
  0x74   :  { %426 = vmatprep.subr.bf16.mxu0 %v1952_v2  ;;  %467 = vmatprep.subr.bf16.mxu1 %v1954_v3 }
  0x75   :  { %259 = vmatprep.mubr.bf16.mxu0 %v2455_v12  ;;  %332 = vmatprep.mubr.bf16.mxu1 %v2455_v12 }
  0x77   :  { %427 = vmatpush1.bf16.msra.mxu0 %v1960_v6  ;;  %468 = vmatpush1.bf16.msra.mxu1 %v1962_v7 }
  0x78   :  { %428 = vmatprep.subr.bf16.mxu0 %v1966_v8  ;;  %469 = vmatprep.subr.bf16.mxu1 %v1968_v9 }
  0x7a   :  { %260 = vmatmul.mubr.bf16.gmra.mrb[12].mxu0 %v142_v10  ;;  %333 = vmatmul.mubr.bf16.gmra.mrb[12].mxu1 %v142_v10 }
  0x7b   :  { %429 = vmatpush1.bf16.msra.mxu0 %v1974_v11  ;;  %470 = vmatpush1.bf16.msra.mxu1 %v1976_v13 }
  0x7c   :  { %430 = vmatprep.subr.bf16.mxu0 %v1978_v14  ;;  %471 = vmatprep.subr.bf16.mxu1 %v1980_v15 }
  0x7d   :  { %448 = vmatprep.mubr.bf16.mxu0 %v2455_v12  ;;  %489 = vmatprep.mubr.bf16.mxu1 %v2455_v12 }
  0x7f   :  { %431 = vmatpush1.bf16.msra.mxu0 %v1986_v16  ;;  %472 = vmatpush1.bf16.msra.mxu1 %v1988_v17 }
  0x80   :  { %565 = vmatprep.subr.bf16.mxu0 %v1890_v37  ;;  %606 = vmatprep.subr.bf16.mxu1 %v1892_v38 }
  0x82   :  { %449 = vmatmul.mubr.bf16.vlgmr.msra.gmra.mrb[16].mxu0 %v383_v18  ;;  %490 = vmatmul.mubr.bf16.vlgmr.msra.gmra.mrb[16].mxu1 %v383_v18 }
  0x83   :  { %566 = vmatpush1.bf16.msra.mxu0 %v1896_v40  ;;  %607 = vmatpush1.bf16.msra.mxu1 %v1898_v41 }
  0x84   :  { %567 = vmatprep.subr.bf16.mxu0 %v1900_v42  ;;  %608 = vmatprep.subr.bf16.mxu1 %v1902_v43 }
  0x85   :  { %597 = vmatprep.mubr.bf16.mxu0 %v2455_v12  ;;  %638 = vmatprep.mubr.bf16.mxu1 %v2455_v12 }
  0x87   :  { %568 = vmatpush1.bf16.msra.mxu0 %v1908_v46  ;;  %609 = vmatpush1.bf16.msra.mxu1 %v1910_v47 }
  0x88   :  { %569 = vmatprep.subr.bf16.mxu0 %v1914_v48  ;;  %610 = vmatprep.subr.bf16.mxu1 %v1916_v49 }
  0x8b   :  { %570 = vmatpush1.bf16.msra.mxu0 %v1922_v51  ;;  %611 = vmatpush1.bf16.msra.mxu1 %v1924_v52 }
  0x8c   :  { %571 = vmatprep.subr.bf16.mxu0 %v1926_v53  ;;  %612 = vmatprep.subr.bf16.mxu1 %v1928_v54 }
  0x8f   :  { %572 = vmatpush1.bf16.msra.mxu0 %v1934_v57  ;;  %613 = vmatpush1.bf16.msra.mxu1 %v1936_v58 }
  0x90   :  { %573 = vmatprep.subr.bf16.mxu0 %v1940_v59  ;;  %614 = vmatprep.subr.bf16.mxu1 %v1942_v60 }
  0x93   :  { %574 = vmatpush1.bf16.msra.mxu0 %v1948_v62  ;;  %615 = vmatpush1.bf16.msra.mxu1 %v1950_v63 }
  0x94   :  { %575 = vmatprep.subr.bf16.mxu0 %v1952_v2  ;;  %616 = vmatprep.subr.bf16.mxu1 %v1954_v3 }
  0x97   :  { %576 = vmatpush1.bf16.msra.mxu0 %v1960_v6  ;;  %617 = vmatpush1.bf16.msra.mxu1 %v1962_v7 }
  0x98   :  { %577 = vmatprep.subr.bf16.mxu0 %v1966_v8  ;;  %618 = vmatprep.subr.bf16.mxu1 %v1968_v9 }
  0x9b   :  { %578 = vmatpush1.bf16.msra.mxu0 %v1974_v11  ;;  %619 = vmatpush1.bf16.msra.mxu1 %v1976_v13 }
  0x9c   :  { %579 = vmatprep.subr.bf16.mxu0 %v1978_v14  ;;  %620 = vmatprep.subr.bf16.mxu1 %v1980_v15 }
  0x9f   :  { %580 = vmatpush1.bf16.msra.mxu0 %v1986_v16  ;;  %621 = vmatpush1.bf16.msra.mxu1 %v1988_v17 }
  0xa0   :  { %715 = vmatprep.subr.bf16.mxu0 %v1890_v37  ;;  %756 = vmatprep.subr.bf16.mxu1 %v1892_v38 }
 0x135   :  { %v2034_v26 = vpop.f32.mrb[0].mxu0  ;;  %v2036_v27 = vpop.f32.mrb[0].mxu1 }
 0x136   :  { %v233_v30 = vpop.f32.mrb[1].mxu0  ;;  %v306_v31 = vpop.f32.mrb[1].mxu1 }
 0x137   :  { %v235_v33 = vpop.f32.mrb[2].mxu0  ;;  %v308_v34 = vpop.f32.mrb[2].mxu1 }
 0x138   :  { %v2040_v35 = vadd.f32 %v235_v33, %v180_v29  ;;  %v237_v36 = vpop.f32.mrb[3].mxu0  ;;  %v2043_v39 = vadd.f32 %v308_v34, %v2032_v25  ;;  %v310_v44 = vpop.f32.mrb[3].mxu1 }
 0x139   :  { %v2045_v45 = vadd.f32 %v237_v36, %v184_v32  ;;  %v2048_v50 = vadd.f32 %v310_v44, %v2038_v28 }
 0x13d   :  { %v241_v55 = vpop.f32.mrb[4].mxu0  ;;  %v314_v56 = vpop.f32.mrb[4].mxu1 }
 0x13e   :  { %v2050_v61 = vadd.f32 %v241_v55, %v180_v29  ;;  %v243_v4 = vpop.f32.mrb[5].mxu0  ;;  %v2053_v5 = vadd.f32 %v314_v56, %v2032_v25  ;;  %v316_v10 = vpop.f32.mrb[5].mxu1 }
 0x13f   :  { %v2055_v18 = vadd.f32 %v243_v4, %v184_v32  ;;  %v245_v0 = vpop.f32.mrb[6].mxu0  ;;  %v2058_v19 = vadd.f32 %v316_v10, %v2038_v28  ;;  %v318_v20 = vpop.f32.mrb[6].mxu1 }
 0x140   :  { %v2060_v21 = vadd.f32 %v245_v0, %v180_v29  ;;  %v247_v22 = vpop.f32.mrb[7].mxu0  ;;  %v2063_v23 = vadd.f32 %v318_v20, %v2032_v25  ;;  %v320_v24 = vpop.f32.mrb[7].mxu1 }
 0x141   :  { %2457 = vst [vmem:[#allocation23_spill] sm:$0xff] %v2055_v18  ;;  %2458 = vst [vmem:[#allocation24_spill] sm:$0xff] %v2058_v19  ;;  %v2065_v33 = vadd.f32 %v247_v22, %v184_v32  ;;  %v2068_v34 = vadd.f32 %v320_v24, %v2038_v28 }
 0x142   :  { %2459 = vst [vmem:[#allocation25_spill] sm:$0xff] %v2060_v21  ;;  %2460 = vst [vmem:[#allocation26_spill] sm:$0xff] %v2063_v23 }
 0x143   :  { %2461 = vst [vmem:[#allocation27_spill] sm:$0xff] %v2065_v33  ;;  %2462 = vst [vmem:[#allocation28_spill] sm:$0xff] %v2068_v34 }
 0x145   :  { %v251_v36 = vpop.f32.mrb[8].mxu0  ;;  %v324_v44 = vpop.f32.mrb[8].mxu1 }
 0x146   :  { %v2070_v55 = vadd.f32 %v251_v36, %v180_v29  ;;  %v253_v56 = vpop.f32.mrb[9].mxu0  ;;  %v2073_v4 = vadd.f32 %v324_v44, %v2032_v25  ;;  %v326_v10 = vpop.f32.mrb[9].mxu1 }
 0x147   :  { %v2075_v0 = vadd.f32 %v253_v56, %v184_v32  ;;  %v255_v12 = vpop.f32.mrb[10].mxu0  ;;  %v2078_v20 = vadd.f32 %v326_v10, %v2038_v28  ;;  %v328_v22 = vpop.f32.mrb[10].mxu1 }
 0x148   :  { %2463 = vst [vmem:[#allocation29_spill] sm:$0xff] %v2070_v55  ;;  %2464 = vst [vmem:[#allocation30_spill] sm:$0xff] %v2073_v4  ;;  %v2080_v33 = vadd.f32 %v255_v12, %v180_v29  ;;  %v257_v24 = vpop.f32.mrb[11].mxu0  ;;  %v2083_v34 = vadd.f32 %v328_v22, %v2032_v25  ;;  %v330_v36 = vpop.f32.mrb[11].mxu1 }
 0x149   :  { %2465 = vst [vmem:[#allocation31_spill] sm:$0xff] %v2075_v0  ;;  %2466 = vst [vmem:[#allocation32_spill] sm:$0xff] %v2078_v20  ;;  %v2085_v55 = vadd.f32 %v257_v24, %v184_v32  ;;  %v2088_v44 = vadd.f32 %v330_v36, %v2038_v28 }
 0x14a   :  { %2467 = vst [vmem:[#allocation33_spill] sm:$0xff] %v2080_v33  ;;  %2468 = vst [vmem:[#allocation34_spill] sm:$0xff] %v2083_v34 }
 0x14b   :  { %2469 = vst [vmem:[#allocation35_spill] sm:$0xff] %v2085_v55  ;;  %2470 = vst [vmem:[#allocation36_spill] sm:$0xff] %v2088_v44 }
 0x14d   :  { %v261_v4 = vpop.f32.mrb[12].mxu0  ;;  %v334_v56 = vpop.f32.mrb[12].mxu1 }
 0x14e   :  { %v2090_v0 = vadd.f32 %v261_v4, %v180_v29  ;;  %v263_v23 = vpop.f32.mrb[13].mxu0  ;;  %v2093_v10 = vadd.f32 %v334_v56, %v2032_v25  ;;  %v336_v12 = vpop.f32.mrb[13].mxu1 }
 0x14f   :  { %v2095_v33 = vadd.f32 %v263_v23, %v184_v32  ;;  %v265_v20 = vpop.f32.mrb[14].mxu0  ;;  %v2098_v22 = vadd.f32 %v336_v12, %v2038_v28  ;;  %v338_v24 = vpop.f32.mrb[14].mxu1  ;;  %v232_v23 = vadd.f32 %v2034_v26, %v180_v29  ;;  %v234_v12 = vadd.f32 %v233_v30, %v184_v32 }
 0x150   :  { %2471 = vst [vmem:[#allocation37_spill] sm:$0xff] %v2090_v0  ;;  %2472 = vst [vmem:[#allocation38_spill] sm:$0xff] %v2093_v10  ;;  %v2100_v55 = vadd.f32 %v265_v20, %v180_v29  ;;  %v267_v36 = vpop.f32.mrb[15].mxu0  ;;  %v2103_v44 = vadd.f32 %v338_v24, %v2032_v25  ;;  %v340_v4 = vpop.f32.mrb[15].mxu1 }
 0x151   :  { %2473 = vst [vmem:[#allocation39_spill] sm:$0xff] %v2095_v33  ;;  %2474 = vst [vmem:[#allocation40_spill] sm:$0xff] %v2098_v22  ;;  %v2105_v0 = vadd.f32 %v267_v36, %v184_v32  ;;  %v2108_v56 = vadd.f32 %v340_v4, %v2038_v28  ;;  %v305_v33 = vadd.f32 %v2036_v27, %v2032_v25 }
 0x152   :  { %2475 = vst [vmem:[#allocation41_spill] sm:$0xff] %v2100_v55  ;;  %2476 = vst [vmem:[#allocation42_spill] sm:$0xff] %v2103_v44  ;;  %v307_v22 = vadd.f32 %v306_v31, %v2038_v28 }
 0x153   :  { %2477 = vst [vmem:[#allocation43_spill] sm:$0xff] %v2105_v0  ;;  %2478 = vst [vmem:[#allocation44_spill] sm:$0xff] %v2108_v56 }
 0x155   :  { %v450_v20 = vpop.f32.mrb[16].mxu0  ;;  %v491_v55 = vpop.f32.mrb[16].mxu1 }
 0x156   :  { %v498_v10 = vadd.f32 %v450_v20, %v232_v23  ;;  %v500_v34 = vadd.f32 %v491_v55, %v305_v33  ;;  %v452_v24 = vpop.f32.mrb[17].mxu0  ;;  %v493_v44 = vpop.f32.mrb[17].mxu1 }
 0x157   :  { %v499_v21 = vadd.f32 %v452_v24, %v234_v12  ;;  %v501_v36 = vadd.f32 %v493_v44, %v307_v22  ;;  %v454_v0 = vpop.f32.mrb[18].mxu0  ;;  %v495_v19 = vpop.f32.mrb[18].mxu1 }
 0x158   :  { %v502_v4 = vmul.f32 0.5, %v498_v10  ;;  %v455_v56 = vpop.f32.mrb[19].mxu0  ;;  %v496_v18 = vpop.f32.mrb[19].mxu1 }
 0x159   :  { %v506_v26 = vmul.f32 0.5, %v499_v21  ;;  %v511_v25 = vmul.f32 0.5, %v501_v36 }
 0x15a   :  { %1636 = vtanh.f32 %v502_v4 }
 0x15b   :  { %1638 = vtanh.f32 %v506_v26 }
 0x15c   :  { %1640 = vtanh.f32 %v500_v34 }
 0x15d   :  { %1642 = vtanh.f32 %v511_v25 }
 0x164   :  { %v1637_v27 = vpop.eup %1636 }
 0x165   :  { %v1639_v28 = vpop.eup %1638  ;;  %v504_v29 = vadd.f32 1.0, %v1637_v27 }
 0x166   :  { %v508_v30 = vadd.f32 1.0, %v1639_v28  ;;  %v1641_v32 = vpop.eup %1640 }
 0x167   :  { %v505_v31 = vmul.f32 0.5, %v504_v29  ;;  %v1643_v18 = vpop.eup %1642 }
 0x168   :  { %v509_v33 = vmul.f32 0.5, %v508_v30  ;;  %v513_v21 = vadd.f32 1.0, %v1643_v18 }
 0x169   :  { %v517_v55 = vmul.f32 %v1641_v32, %v505_v31 }
 0x16a   :  { %v516_v0 = vmul.f32 %v509_v33, %v1886_v1  ;;  %v514_v44 = vmul.f32 0.5, %v513_v21  ;;  %v2479_v1 = vmov 0  }
 0x16c   :  { %v2115_v19 = vadd.f32 %v517_v55, %v516_v0 }
 0x16e   :  { %1644 = vtanh.f32 %v2115_v19 }
 0x178   :  { %v1645_v34 = vpop.eup %1644 }
 0x179   :  { %v520_v10 = vmul.f32 %v1645_v34, %v514_v44 }
 0x17b   :  { %523 = vst [vmem:[#allocation13] sm:$0xff] %v520_v10  ;;  %v532_v22 = vpack.c.bf16 %v520_v10, %v520_v10 }
 0x17d   :  { %598 = vmatmul.mubr.bf16.vlgmr.msra.gmra.mrb[20].mxu0 %v532_v22  ;;  %639 = vmatmul.mubr.bf16.vlgmr.msra.gmra.mrb[20].mxu1 %v532_v22 }
 0x17e   :  { %716 = vmatpush1.bf16.msra.mxu0 %v1896_v40  ;;  %757 = vmatpush1.bf16.msra.mxu1 %v1898_v41 }
 0x17f   :  { %717 = vmatprep.subr.bf16.mxu0 %v1900_v42  ;;  %758 = vmatprep.subr.bf16.mxu1 %v1902_v43 }
 0x180   :  { %747 = vmatprep.mubr.bf16.mxu0 %v2479_v1  ;;  %788 = vmatprep.mubr.bf16.mxu1 %v2479_v1 }
 0x182   :  { %718 = vmatpush1.bf16.msra.mxu0 %v1908_v46  ;;  %759 = vmatpush1.bf16.msra.mxu1 %v1910_v47 }
 0x183   :  { %719 = vmatprep.subr.bf16.mxu0 %v1914_v48  ;;  %760 = vmatprep.subr.bf16.mxu1 %v1916_v49 }
 0x186   :  { %720 = vmatpush1.bf16.msra.mxu0 %v1922_v51  ;;  %761 = vmatpush1.bf16.msra.mxu1 %v1924_v52 }
 0x187   :  { %721 = vmatprep.subr.bf16.mxu0 %v1926_v53  ;;  %762 = vmatprep.subr.bf16.mxu1 %v1928_v54 }
 0x18a   :  { %722 = vmatpush1.bf16.msra.mxu0 %v1934_v57  ;;  %763 = vmatpush1.bf16.msra.mxu1 %v1936_v58 }
 0x18b   :  { %723 = vmatprep.subr.bf16.mxu0 %v1940_v59  ;;  %764 = vmatprep.subr.bf16.mxu1 %v1942_v60 }
 0x18e   :  { %724 = vmatpush1.bf16.msra.mxu0 %v1948_v62  ;;  %765 = vmatpush1.bf16.msra.mxu1 %v1950_v63 }
 0x18f   :  { %725 = vmatprep.subr.bf16.mxu0 %v1952_v2  ;;  %766 = vmatprep.subr.bf16.mxu1 %v1954_v3 }
 0x192   :  { %726 = vmatpush1.bf16.msra.mxu0 %v1960_v6  ;;  %767 = vmatpush1.bf16.msra.mxu1 %v1962_v7 }
 0x193   :  { %727 = vmatprep.subr.bf16.mxu0 %v1966_v8  ;;  %768 = vmatprep.subr.bf16.mxu1 %v1968_v9 }
 0x196   :  { %728 = vmatpush1.bf16.msra.mxu0 %v1974_v11  ;;  %769 = vmatpush1.bf16.msra.mxu1 %v1976_v13 }
 0x197   :  { %729 = vmatprep.subr.bf16.mxu0 %v1978_v14  ;;  %770 = vmatprep.subr.bf16.mxu1 %v1980_v15 }
 0x19a   :  { %730 = vmatpush1.bf16.msra.mxu0 %v1986_v16  ;;  %771 = vmatpush1.bf16.msra.mxu1 %v1988_v17 }
 0x19b   :  { %865 = vmatprep.subr.bf16.mxu0 %v1890_v37  ;;  %906 = vmatprep.subr.bf16.mxu1 %v1892_v38 }
 0x250   :  { %v599_v56 = vpop.f32.mrb[20].mxu0  ;;  %v640_v23 = vpop.f32.mrb[20].mxu1 }
 0x251   :  { %v647_v12 = vadd.f32 %v599_v56, %v2040_v35  ;;  %v649_v20 = vadd.f32 %v640_v23, %v2043_v39  ;;  %v601_v24 = vpop.f32.mrb[21].mxu0  ;;  %v642_v36 = vpop.f32.mrb[21].mxu1 }
 0x252   :  { %v648_v4 = vadd.f32 %v601_v24, %v2045_v45  ;;  %v650_v26 = vadd.f32 %v642_v36, %v2048_v50  ;;  %v603_v25 = vpop.f32.mrb[22].mxu0  ;;  %v644_v27 = vpop.f32.mrb[22].mxu1 }
 0x253   :  { %v651_v28 = vmul.f32 0.5, %v647_v12  ;;  %v604_v29 = vpop.f32.mrb[23].mxu0  ;;  %v645_v30 = vpop.f32.mrb[23].mxu1  ;;  %v2480_v25 = vld [vmem:[#allocation23_spill] sm:$0xff] }
 0x254   :  { %v655_v31 = vmul.f32 0.5, %v648_v4  ;;  %v660_v32 = vmul.f32 0.5, %v650_v26 }
 0x255   :  { %1646 = vtanh.f32 %v651_v28  ;;  %v2481_v28 = vld [vmem:[#allocation24_spill] sm:$0xff] }
 0x256   :  { %1648 = vtanh.f32 %v655_v31 }
 0x257   :  { %1650 = vtanh.f32 %v649_v20 }
 0x258   :  { %1652 = vtanh.f32 %v660_v32 }
 0x25f   :  { %v1647_v33 = vpop.eup %1646 }
 0x260   :  { %v1649_v35 = vpop.eup %1648  ;;  %v653_v55 = vadd.f32 1.0, %v1647_v33 }
 0x261   :  { %v657_v39 = vadd.f32 1.0, %v1649_v35  ;;  %v1651_v18 = vpop.eup %1650 }
 0x262   :  { %v654_v0 = vmul.f32 0.5, %v653_v55  ;;  %v1653_v34 = vpop.eup %1652 }
 0x263   :  { %v658_v45 = vmul.f32 0.5, %v657_v39  ;;  %v662_v10 = vadd.f32 1.0, %v1653_v34 }
 0x264   :  { %v666_v21 = vmul.f32 %v1651_v18, %v654_v0 }
 0x265   :  { %v665_v50 = vmul.f32 %v658_v45, %v2115_v19  ;;  %v663_v22 = vmul.f32 0.5, %v662_v10 }
 0x267   :  { %v2157_v44 = vadd.f32 %v666_v21, %v665_v50 }
 0x269   :  { %1654 = vtanh.f32 %v2157_v44 }
 0x273   :  { %v1655_v56 = vpop.eup %1654 }
 0x274   :  { %v669_v23 = vmul.f32 %v1655_v56, %v663_v22 }
 0x276   :  { %673 = vst [vmem:[#allocation13 + $0x8] sm:$0xff] %v669_v23  ;;  %v682_v12 = vpack.c.bf16 %v669_v23, %v669_v23 }
 0x278   :  { %748 = vmatmul.mubr.bf16.vlgmr.msra.gmra.mrb[24].mxu0 %v682_v12  ;;  %789 = vmatmul.mubr.bf16.vlgmr.msra.gmra.mrb[24].mxu1 %v682_v12 }
 0x279   :  { %866 = vmatpush1.bf16.msra.mxu0 %v1896_v40  ;;  %907 = vmatpush1.bf16.msra.mxu1 %v1898_v41 }
 0x27a   :  { %867 = vmatprep.subr.bf16.mxu0 %v1900_v42  ;;  %908 = vmatprep.subr.bf16.mxu1 %v1902_v43 }
 0x27b   :  { %897 = vmatprep.mubr.bf16.mxu0 %v2479_v1  ;;  %938 = vmatprep.mubr.bf16.mxu1 %v2479_v1 }
 0x27d   :  { %868 = vmatpush1.bf16.msra.mxu0 %v1908_v46  ;;  %909 = vmatpush1.bf16.msra.mxu1 %v1910_v47 }
 0x27e   :  { %869 = vmatprep.subr.bf16.mxu0 %v1914_v48  ;;  %910 = vmatprep.subr.bf16.mxu1 %v1916_v49 }
 0x281   :  { %870 = vmatpush1.bf16.msra.mxu0 %v1922_v51  ;;  %911 = vmatpush1.bf16.msra.mxu1 %v1924_v52 }
 0x282   :  { %871 = vmatprep.subr.bf16.mxu0 %v1926_v53  ;;  %912 = vmatprep.subr.bf16.mxu1 %v1928_v54 }
 0x285   :  { %872 = vmatpush1.bf16.msra.mxu0 %v1934_v57  ;;  %913 = vmatpush1.bf16.msra.mxu1 %v1936_v58 }
 0x286   :  { %873 = vmatprep.subr.bf16.mxu0 %v1940_v59  ;;  %914 = vmatprep.subr.bf16.mxu1 %v1942_v60 }
 0x289   :  { %874 = vmatpush1.bf16.msra.mxu0 %v1948_v62  ;;  %915 = vmatpush1.bf16.msra.mxu1 %v1950_v63 }
 0x28a   :  { %875 = vmatprep.subr.bf16.mxu0 %v1952_v2  ;;  %916 = vmatprep.subr.bf16.mxu1 %v1954_v3 }
 0x28d   :  { %876 = vmatpush1.bf16.msra.mxu0 %v1960_v6  ;;  %917 = vmatpush1.bf16.msra.mxu1 %v1962_v7 }
 0x28e   :  { %877 = vmatprep.subr.bf16.mxu0 %v1966_v8  ;;  %918 = vmatprep.subr.bf16.mxu1 %v1968_v9 }
 0x291   :  { %878 = vmatpush1.bf16.msra.mxu0 %v1974_v11  ;;  %919 = vmatpush1.bf16.msra.mxu1 %v1976_v13 }
 0x292   :  { %879 = vmatprep.subr.bf16.mxu0 %v1978_v14  ;;  %920 = vmatprep.subr.bf16.mxu1 %v1980_v15 }
 0x295   :  { %880 = vmatpush1.bf16.msra.mxu0 %v1986_v16  ;;  %921 = vmatpush1.bf16.msra.mxu1 %v1988_v17 }
 0x296   :  { %1015 = vmatprep.subr.bf16.mxu0 %v1890_v37  ;;  %1056 = vmatprep.subr.bf16.mxu1 %v1892_v38 }
 0x34b   :  { %v749_v19 = vpop.f32.mrb[24].mxu0  ;;  %v790_v20 = vpop.f32.mrb[24].mxu1 }
 0x34c   :  { %v797_v24 = vadd.f32 %v749_v19, %v2050_v61  ;;  %v799_v36 = vadd.f32 %v790_v20, %v2053_v5  ;;  %v751_v4 = vpop.f32.mrb[25].mxu0  ;;  %v792_v26 = vpop.f32.mrb[25].mxu1 }
 0x34d   :  { %v798_v27 = vadd.f32 %v751_v4, %v2480_v25  ;;  %v800_v29 = vadd.f32 %v792_v26, %v2481_v28  ;;  %v753_v30 = vpop.f32.mrb[26].mxu0  ;;  %v794_v31 = vpop.f32.mrb[26].mxu1  ;;  %v2244_v26 = vld [vmem:[#allocation3 + $0x8] sm:$0xff]  ;;  %v2246_v25 = vld [vmem:[#allocation3 + $0x18] sm:$0xff]  ;;  %v2252_v28 = vld [vmem:[#allocation3 + $0x10] sm:$0xff] }
 0x34e   :  { %v801_v32 = vmul.f32 0.5, %v797_v24  ;;  %v754_v33 = vpop.f32.mrb[27].mxu0  ;;  %v795_v35 = vpop.f32.mrb[27].mxu1  ;;  %v2258_v30 = vld [vmem:[#allocation3 + $0x38] sm:$0xff]  ;;  %v2262_v31 = vld [vmem:[#allocation3 + $0x20] sm:$0xff] }
 0x34f   :  { %v805_v37 = vmul.f32 0.5, %v798_v27  ;;  %v810_v38 = vmul.f32 0.5, %v800_v29  ;;  %v2250_v27 = vld [vmem:[#allocation3] sm:$0xff]  ;;  %v2256_v29 = vld [vmem:[#allocation3 + $0x28] sm:$0xff]  ;;  %v2270_v35 = vld [vmem:[#allocation3 + $0x58] sm:$0xff] }
 0x350   :  { %1656 = vtanh.f32 %v801_v32  ;;  %v2264_v32 = vld [vmem:[#allocation3 + $0x30] sm:$0xff]  ;;  %v2268_v33 = vld [vmem:[#allocation3 + $0x48] sm:$0xff] }
 0x351   :  { %1658 = vtanh.f32 %v805_v37  ;;  %v2274_v37 = vld [vmem:[#allocation3 + $0x40] sm:$0xff] }
 0x352   :  { %1660 = vtanh.f32 %v799_v36 }
 0x353   :  { %1662 = vtanh.f32 %v810_v38  ;;  %v2276_v38 = vld [vmem:[#allocation3 + $0x50] sm:$0xff] }
 0x35a   :  { %v1657_v55 = vpop.eup %1656 }
 0x35b   :  { %v1659_v61 = vpop.eup %1658  ;;  %v803_v39 = vadd.f32 1.0, %v1657_v55  ;;  %v2280_v55 = vld [vmem:[#allocation3 + $0x68] sm:$0xff] }
 0x35c   :  { %v807_v5 = vadd.f32 1.0, %v1659_v61  ;;  %v1661_v18 = vpop.eup %1660  ;;  %v2282_v61 = vld [vmem:[#allocation3 + $0x78] sm:$0xff] }
 0x35d   :  { %v804_v0 = vmul.f32 0.5, %v803_v39  ;;  %v1663_v10 = vpop.eup %1662  ;;  %v2286_v39 = vld [vmem:[#allocation3 + $0x60] sm:$0xff] }
 0x35e   :  { %v808_v45 = vmul.f32 0.5, %v807_v5  ;;  %v812_v22 = vadd.f32 1.0, %v1663_v10  ;;  %v2288_v5 = vld [vmem:[#allocation3 + $0x70] sm:$0xff]  ;;  %v2310_v10 = vld [vmem:[#allocation3 + $0xa0] sm:$0xff] }
 0x35f   :  { %v816_v21 = vmul.f32 %v1661_v18, %v804_v0  ;;  %v2292_v0 = vld [vmem:[#allocation3 + $0x88] sm:$0xff]  ;;  %v2294_v18 = vld [vmem:[#allocation3 + $0x98] sm:$0xff] }
 0x360   :  { %v815_v50 = vmul.f32 %v808_v45, %v2157_v44  ;;  %v813_v56 = vmul.f32 0.5, %v812_v22  ;;  %v2298_v45 = vld [vmem:[#allocation3 + $0x80] sm:$0xff]  ;;  %v2312_v22 = vld [vmem:[#allocation3 + $0xb0] sm:$0xff] }
 0x362   :  { %v2199_v34 = vadd.f32 %v816_v21, %v815_v50  ;;  %v2300_v21 = vld [vmem:[#allocation3 + $0x90] sm:$0xff]  ;;  %v2304_v50 = vld [vmem:[#allocation3 + $0xa8] sm:$0xff] }
 0x364   :  { %1664 = vtanh.f32 %v2199_v34 }
 0x36e   :  { %v1665_v23 = vpop.eup %1664 }
 0x36f   :  { %v819_v12 = vmul.f32 %v1665_v23, %v813_v56  ;;  %v2316_v56 = vld [vmem:[#allocation3 + $0xc8] sm:$0xff]  ;;  %v2318_v23 = vld [vmem:[#allocation3 + $0xd8] sm:$0xff] }
 0x371   :  { %823 = vst [vmem:[#allocation13 + $0x10] sm:$0xff] %v819_v12  ;;  %v832_v19 = vpack.c.bf16 %v819_v12, %v819_v12  ;;  %v2322_v12 = vld [vmem:[#allocation3 + $0xc0] sm:$0xff] }
 0x373   :  { %898 = vmatmul.mubr.bf16.vlgmr.msra.gmra.mrb[28].mxu0 %v832_v19  ;;  %939 = vmatmul.mubr.bf16.vlgmr.msra.gmra.mrb[28].mxu1 %v832_v19  ;;  %v2324_v19 = vld [vmem:[#allocation3 + $0xd0] sm:$0xff] }
 0x374   :  { %1016 = vmatpush1.bf16.msra.mxu0 %v1896_v40  ;;  %1057 = vmatpush1.bf16.msra.mxu1 %v1898_v41 }
 0x375   :  { %1017 = vmatprep.subr.bf16.mxu0 %v1900_v42  ;;  %1058 = vmatprep.subr.bf16.mxu1 %v1902_v43  ;;  %v2482_v42 = vld [vmem:[#allocation25_spill] sm:$0xff] }
 0x376   :  { %1047 = vmatprep.mubr.bf16.mxu0 %v2479_v1  ;;  %1088 = vmatprep.mubr.bf16.mxu1 %v2479_v1 }
 0x378   :  { %1018 = vmatpush1.bf16.msra.mxu0 %v1908_v46  ;;  %1059 = vmatpush1.bf16.msra.mxu1 %v1910_v47  ;;  %v2483_v46 = vld [vmem:[#allocation26_spill] sm:$0xff] }
 0x379   :  { %1019 = vmatprep.subr.bf16.mxu0 %v1914_v48  ;;  %1060 = vmatprep.subr.bf16.mxu1 %v1916_v49 }
 0x37c   :  { %1020 = vmatpush1.bf16.msra.mxu0 %v1922_v51  ;;  %1061 = vmatpush1.bf16.msra.mxu1 %v1924_v52  ;;  %v2484_v51 = vld [vmem:[#allocation27_spill] sm:$0xff] }
 0x37d   :  { %1021 = vmatprep.subr.bf16.mxu0 %v1926_v53  ;;  %1062 = vmatprep.subr.bf16.mxu1 %v1928_v54  ;;  %v2485_v53 = vld [vmem:[#allocation28_spill] sm:$0xff] }
 0x380   :  { %1022 = vmatpush1.bf16.msra.mxu0 %v1934_v57  ;;  %1063 = vmatpush1.bf16.msra.mxu1 %v1936_v58 }
 0x381   :  { %1023 = vmatprep.subr.bf16.mxu0 %v1940_v59  ;;  %1064 = vmatprep.subr.bf16.mxu1 %v1942_v60 }
 0x384   :  { %1024 = vmatpush1.bf16.msra.mxu0 %v1948_v62  ;;  %1065 = vmatpush1.bf16.msra.mxu1 %v1950_v63 }
 0x385   :  { %1025 = vmatprep.subr.bf16.mxu0 %v1952_v2  ;;  %1066 = vmatprep.subr.bf16.mxu1 %v1954_v3 }
 0x388   :  { %1026 = vmatpush1.bf16.msra.mxu0 %v1960_v6  ;;  %1067 = vmatpush1.bf16.msra.mxu1 %v1962_v7 }
 0x389   :  { %1027 = vmatprep.subr.bf16.mxu0 %v1966_v8  ;;  %1068 = vmatprep.subr.bf16.mxu1 %v1968_v9 }
 0x38c   :  { %1028 = vmatpush1.bf16.msra.mxu0 %v1974_v11  ;;  %1069 = vmatpush1.bf16.msra.mxu1 %v1976_v13 }
 0x38d   :  { %1029 = vmatprep.subr.bf16.mxu0 %v1978_v14  ;;  %1070 = vmatprep.subr.bf16.mxu1 %v1980_v15 }
 0x390   :  { %1030 = vmatpush1.bf16.msra.mxu0 %v1986_v16  ;;  %1071 = vmatpush1.bf16.msra.mxu1 %v1988_v17 }
 0x391   :  { %1165 = vmatprep.subr.bf16.mxu0 %v2244_v26  ;;  %1206 = vmatprep.subr.bf16.mxu1 %v2246_v25 }
 0x446   :  { %v899_v40 = vpop.f32.mrb[28].mxu0  ;;  %v940_v41 = vpop.f32.mrb[28].mxu1 }
 0x447   :  { %v947_v43 = vadd.f32 %v899_v40, %v2482_v42  ;;  %v949_v47 = vadd.f32 %v940_v41, %v2483_v46  ;;  %v901_v48 = vpop.f32.mrb[29].mxu0  ;;  %v942_v49 = vpop.f32.mrb[29].mxu1  ;;  %v2328_v40 = vld [vmem:[#allocation3 + $0xe8] sm:$0xff]  ;;  %v2330_v41 = vld [vmem:[#allocation3 + $0xf8] sm:$0xff]  ;;  %v2334_v42 = vld [vmem:[#allocation3 + $0xe0] sm:$0xff] }
 0x448   :  { %v948_v52 = vadd.f32 %v901_v48, %v2484_v51  ;;  %v950_v54 = vadd.f32 %v942_v49, %v2485_v53  ;;  %v903_v57 = vpop.f32.mrb[30].mxu0  ;;  %v944_v58 = vpop.f32.mrb[30].mxu1  ;;  %v2486_v48 = vld [vmem:[#allocation29_spill] sm:$0xff]  ;;  %v2487_v51 = vld [vmem:[#allocation30_spill] sm:$0xff] }
 0x449   :  { %v951_v59 = vmul.f32 0.5, %v947_v43  ;;  %v904_v60 = vpop.f32.mrb[31].mxu0  ;;  %v945_v62 = vpop.f32.mrb[31].mxu1  ;;  %v2336_v43 = vld [vmem:[#allocation3 + $0xf0] sm:$0xff]  ;;  %v2488_v57 = vld [vmem:[#allocation31_spill] sm:$0xff] }
 0x44a   :  { %v955_v63 = vmul.f32 0.5, %v948_v52  ;;  %v960_v2 = vmul.f32 0.5, %v950_v54 }
 0x44b   :  { %1666 = vtanh.f32 %v951_v59  ;;  %v2489_v59 = vld [vmem:[#allocation32_spill] sm:$0xff] }
 0x44c   :  { %1668 = vtanh.f32 %v955_v63 }
 0x44d   :  { %1670 = vtanh.f32 %v949_v47 }
 0x44e   :  { %1672 = vtanh.f32 %v960_v2 }
 0x455   :  { %v1667_v3 = vpop.eup %1666 }
 0x456   :  { %v1669_v6 = vpop.eup %1668  ;;  %v953_v7 = vadd.f32 1.0, %v1667_v3 }
 0x457   :  { %v957_v8 = vadd.f32 1.0, %v1669_v6  ;;  %v1671_v11 = vpop.eup %1670 }
 0x458   :  { %v954_v9 = vmul.f32 0.5, %v953_v7  ;;  %v1673_v17 = vpop.eup %1672 }
 0x459   :  { %v958_v13 = vmul.f32 0.5, %v957_v8  ;;  %v962_v44 = vadd.f32 1.0, %v1673_v17 }
 0x45a   :  { %v966_v14 = vmul.f32 %v1671_v11, %v954_v9 }
 0x45b   :  { %v965_v15 = vmul.f32 %v958_v13, %v2199_v34  ;;  %v963_v20 = vmul.f32 0.5, %v962_v44  ;;  %v2306_v34 = vld [vmem:[#allocation3 + $0xb8] sm:$0xff] }
 0x45d   :  { %v2239_v16 = vadd.f32 %v966_v14, %v965_v15 }
 0x45f   :  { %1674 = vtanh.f32 %v2239_v16 }
 0x469   :  { %v1675_v24 = vpop.eup %1674 }
 0x46a   :  { %v969_v36 = vmul.f32 %v1675_v24, %v963_v20 }
 0x46c   :  { %973 = vst [vmem:[#allocation13 + $0x18] sm:$0xff] %v969_v36  ;;  %v982_v4 = vpack.c.bf16 %v969_v36, %v969_v36 }
 0x46e   :  { %1048 = vmatmul.mubr.bf16.vlgmr.msra.gmra.mrb[32].mxu0 %v982_v4  ;;  %1089 = vmatmul.mubr.bf16.vlgmr.msra.gmra.mrb[32].mxu1 %v982_v4 }
 0x46f   :  { %1197 = vmatprep.mubr.bf16.mxu0 %v2479_v1  ;;  %1238 = vmatprep.mubr.bf16.mxu1 %v2479_v1 }
 0x470   :  { %1166 = vmatpush1.bf16.msra.mxu0 %v2250_v27  ;;  %1207 = vmatpush1.bf16.msra.mxu1 %v2252_v28 }
 0x471   :  { %1167 = vmatprep.subr.bf16.mxu0 %v2256_v29  ;;  %1208 = vmatprep.subr.bf16.mxu1 %v2258_v30 }
 0x474   :  { %1168 = vmatpush1.bf16.msra.mxu0 %v2262_v31  ;;  %1209 = vmatpush1.bf16.msra.mxu1 %v2264_v32 }
 0x475   :  { %1169 = vmatprep.subr.bf16.mxu0 %v2268_v33  ;;  %1210 = vmatprep.subr.bf16.mxu1 %v2270_v35 }
 0x478   :  { %1170 = vmatpush1.bf16.msra.mxu0 %v2274_v37  ;;  %1211 = vmatpush1.bf16.msra.mxu1 %v2276_v38 }
 0x479   :  { %1171 = vmatprep.subr.bf16.mxu0 %v2280_v55  ;;  %1212 = vmatprep.subr.bf16.mxu1 %v2282_v61 }
 0x47c   :  { %1172 = vmatpush1.bf16.msra.mxu0 %v2286_v39  ;;  %1213 = vmatpush1.bf16.msra.mxu1 %v2288_v5 }
 0x47d   :  { %1173 = vmatprep.subr.bf16.mxu0 %v2292_v0  ;;  %1214 = vmatprep.subr.bf16.mxu1 %v2294_v18 }
 0x480   :  { %1174 = vmatpush1.bf16.msra.mxu0 %v2298_v45  ;;  %1215 = vmatpush1.bf16.msra.mxu1 %v2300_v21 }
 0x481   :  { %1175 = vmatprep.subr.bf16.mxu0 %v2304_v50  ;;  %1216 = vmatprep.subr.bf16.mxu1 %v2306_v34 }
 0x484   :  { %1176 = vmatpush1.bf16.msra.mxu0 %v2310_v10  ;;  %1217 = vmatpush1.bf16.msra.mxu1 %v2312_v22 }
 0x485   :  { %1177 = vmatprep.subr.bf16.mxu0 %v2316_v56  ;;  %1218 = vmatprep.subr.bf16.mxu1 %v2318_v23 }
 0x488   :  { %1178 = vmatpush1.bf16.msra.mxu0 %v2322_v12  ;;  %1219 = vmatpush1.bf16.msra.mxu1 %v2324_v19 }
 0x489   :  { %1179 = vmatprep.subr.bf16.mxu0 %v2328_v40  ;;  %1220 = vmatprep.subr.bf16.mxu1 %v2330_v41 }
 0x48c   :  { %1180 = vmatpush1.bf16.msra.mxu0 %v2334_v42  ;;  %1221 = vmatpush1.bf16.msra.mxu1 %v2336_v43 }
 0x48d   :  { %1315 = vmatprep.subr.bf16.mxu0 %v2244_v26  ;;  %1356 = vmatprep.subr.bf16.mxu1 %v2246_v25 }
 0x541   :  { %v1049_v46 = vpop.f32.mrb[32].mxu0  ;;  %v1090_v47 = vpop.f32.mrb[32].mxu1 }
 0x542   :  { %v1097_v49 = vadd.f32 %v1049_v46, %v2486_v48  ;;  %v1099_v52 = vadd.f32 %v1090_v47, %v2487_v51  ;;  %v1051_v53 = vpop.f32.mrb[33].mxu0  ;;  %v1092_v54 = vpop.f32.mrb[33].mxu1 }
 0x543   :  { %v1098_v58 = vadd.f32 %v1051_v53, %v2488_v57  ;;  %v1100_v60 = vadd.f32 %v1092_v54, %v2489_v59  ;;  %v1053_v62 = vpop.f32.mrb[34].mxu0  ;;  %v1094_v63 = vpop.f32.mrb[34].mxu1  ;;  %v2490_v53 = vld [vmem:[#allocation33_spill] sm:$0xff]  ;;  %v2491_v57 = vld [vmem:[#allocation34_spill] sm:$0xff] }
 0x544   :  { %v1101_v2 = vmul.f32 0.5, %v1097_v49  ;;  %v1054_v3 = vpop.f32.mrb[35].mxu0  ;;  %v1095_v6 = vpop.f32.mrb[35].mxu1  ;;  %v2492_v62 = vld [vmem:[#allocation35_spill] sm:$0xff] }
 0x545   :  { %v1105_v7 = vmul.f32 0.5, %v1098_v58  ;;  %v1110_v8 = vmul.f32 0.5, %v1100_v60 }
 0x546   :  { %1676 = vtanh.f32 %v1101_v2  ;;  %v2493_v2 = vld [vmem:[#allocation36_spill] sm:$0xff] }
 0x547   :  { %1678 = vtanh.f32 %v1105_v7 }
 0x548   :  { %1680 = vtanh.f32 %v1099_v52 }
 0x549   :  { %1682 = vtanh.f32 %v1110_v8 }
 0x550   :  { %v1677_v9 = vpop.eup %1676 }
 0x551   :  { %v1679_v11 = vpop.eup %1678  ;;  %v1103_v13 = vadd.f32 1.0, %v1677_v9 }
 0x552   :  { %v1107_v14 = vadd.f32 1.0, %v1679_v11  ;;  %v1681_v17 = vpop.eup %1680 }
 0x553   :  { %v1104_v15 = vmul.f32 0.5, %v1103_v13  ;;  %v1683_v4 = vpop.eup %1682 }
 0x554   :  { %v1108_v44 = vmul.f32 0.5, %v1107_v14  ;;  %v1112_v46 = vadd.f32 1.0, %v1683_v4 }
 0x555   :  { %v1116_v20 = vmul.f32 %v1681_v17, %v1104_v15 }
 0x556   :  { %v1115_v24 = vmul.f32 %v1108_v44, %v2239_v16  ;;  %v1113_v47 = vmul.f32 0.5, %v1112_v46 }
 0x558   :  { %v2347_v36 = vadd.f32 %v1116_v20, %v1115_v24 }
 0x55a   :  { %1684 = vtanh.f32 %v2347_v36 }
 0x564   :  { %v1685_v48 = vpop.eup %1684 }
 0x565   :  { %v1119_v49 = vmul.f32 %v1685_v48, %v1113_v47 }
 0x567   :  { %1123 = vst [vmem:[#allocation13 + $0x20] sm:$0xff] %v1119_v49  ;;  %v1132_v51 = vpack.c.bf16 %v1119_v49, %v1119_v49 }
 0x569   :  { %1198 = vmatmul.mubr.bf16.vlgmr.msra.gmra.mrb[36].mxu0 %v1132_v51  ;;  %1239 = vmatmul.mubr.bf16.vlgmr.msra.gmra.mrb[36].mxu1 %v1132_v51 }
 0x56a   :  { %1316 = vmatpush1.bf16.msra.mxu0 %v2250_v27  ;;  %1357 = vmatpush1.bf16.msra.mxu1 %v2252_v28 }
 0x56b   :  { %1317 = vmatprep.subr.bf16.mxu0 %v2256_v29  ;;  %1358 = vmatprep.subr.bf16.mxu1 %v2258_v30 }
 0x56c   :  { %1347 = vmatprep.mubr.bf16.mxu0 %v2479_v1  ;;  %1388 = vmatprep.mubr.bf16.mxu1 %v2479_v1 }
 0x56e   :  { %1318 = vmatpush1.bf16.msra.mxu0 %v2262_v31  ;;  %1359 = vmatpush1.bf16.msra.mxu1 %v2264_v32 }
 0x56f   :  { %1319 = vmatprep.subr.bf16.mxu0 %v2268_v33  ;;  %1360 = vmatprep.subr.bf16.mxu1 %v2270_v35 }
 0x572   :  { %1320 = vmatpush1.bf16.msra.mxu0 %v2274_v37  ;;  %1361 = vmatpush1.bf16.msra.mxu1 %v2276_v38 }
 0x573   :  { %1321 = vmatprep.subr.bf16.mxu0 %v2280_v55  ;;  %1362 = vmatprep.subr.bf16.mxu1 %v2282_v61 }
 0x576   :  { %1322 = vmatpush1.bf16.msra.mxu0 %v2286_v39  ;;  %1363 = vmatpush1.bf16.msra.mxu1 %v2288_v5 }
 0x577   :  { %1323 = vmatprep.subr.bf16.mxu0 %v2292_v0  ;;  %1364 = vmatprep.subr.bf16.mxu1 %v2294_v18 }
 0x57a   :  { %1324 = vmatpush1.bf16.msra.mxu0 %v2298_v45  ;;  %1365 = vmatpush1.bf16.msra.mxu1 %v2300_v21 }
 0x57b   :  { %1325 = vmatprep.subr.bf16.mxu0 %v2304_v50  ;;  %1366 = vmatprep.subr.bf16.mxu1 %v2306_v34 }
 0x57e   :  { %1326 = vmatpush1.bf16.msra.mxu0 %v2310_v10  ;;  %1367 = vmatpush1.bf16.msra.mxu1 %v2312_v22 }
 0x57f   :  { %1327 = vmatprep.subr.bf16.mxu0 %v2316_v56  ;;  %1368 = vmatprep.subr.bf16.mxu1 %v2318_v23 }
 0x582   :  { %1328 = vmatpush1.bf16.msra.mxu0 %v2322_v12  ;;  %1369 = vmatpush1.bf16.msra.mxu1 %v2324_v19 }
 0x583   :  { %1329 = vmatprep.subr.bf16.mxu0 %v2328_v40  ;;  %1370 = vmatprep.subr.bf16.mxu1 %v2330_v41 }
 0x586   :  { %1330 = vmatpush1.bf16.msra.mxu0 %v2334_v42  ;;  %1371 = vmatpush1.bf16.msra.mxu1 %v2336_v43 }
 0x587   :  { %1465 = vmatprep.subr.bf16.mxu0 %v2244_v26  ;;  %1506 = vmatprep.subr.bf16.mxu1 %v2246_v25 }
 0x63c   :  { %v1199_v16 = vpop.f32.mrb[36].mxu0  ;;  %v1240_v52 = vpop.f32.mrb[36].mxu1 }
 0x63d   :  { %v1247_v54 = vadd.f32 %v1199_v16, %v2490_v53  ;;  %v1249_v58 = vadd.f32 %v1240_v52, %v2491_v57  ;;  %v1201_v59 = vpop.f32.mrb[37].mxu0  ;;  %v1242_v60 = vpop.f32.mrb[37].mxu1 }
 0x63e   :  { %v1248_v63 = vadd.f32 %v1201_v59, %v2492_v62  ;;  %v1250_v3 = vadd.f32 %v1242_v60, %v2493_v2  ;;  %v1203_v6 = vpop.f32.mrb[38].mxu0  ;;  %v1244_v7 = vpop.f32.mrb[38].mxu1  ;;  %v2498_v62 = vld [vmem:[#allocation41_spill] sm:$0xff]  ;;  %v2499_v2 = vld [vmem:[#allocation42_spill] sm:$0xff] }
 0x63f   :  { %v1251_v8 = vmul.f32 0.5, %v1247_v54  ;;  %v1204_v9 = vpop.f32.mrb[39].mxu0  ;;  %v1245_v11 = vpop.f32.mrb[39].mxu1 }
 0x640   :  { %v1255_v26 = vmul.f32 0.5, %v1248_v63  ;;  %v1260_v25 = vmul.f32 0.5, %v1250_v3  ;;  %v2501_v11 = vld [vmem:[#allocation44_spill] sm:$0xff] }
 0x641   :  { %1686 = vtanh.f32 %v1251_v8  ;;  %v2500_v8 = vld [vmem:[#allocation43_spill] sm:$0xff] }
 0x642   :  { %1688 = vtanh.f32 %v1255_v26 }
 0x643   :  { %1690 = vtanh.f32 %v1249_v58 }
 0x644   :  { %1692 = vtanh.f32 %v1260_v25 }
 0x64b   :  { %v1687_v13 = vpop.eup %1686 }
 0x64c   :  { %v1689_v14 = vpop.eup %1688  ;;  %v1253_v15 = vadd.f32 1.0, %v1687_v13 }
 0x64d   :  { %v1257_v17 = vadd.f32 1.0, %v1689_v14  ;;  %v1691_v20 = vpop.eup %1690 }
 0x64e   :  { %v1254_v44 = vmul.f32 0.5, %v1253_v15  ;;  %v1693_v48 = vpop.eup %1692 }
 0x64f   :  { %v1258_v24 = vmul.f32 0.5, %v1257_v17  ;;  %v1262_v49 = vadd.f32 1.0, %v1693_v48 }
 0x650   :  { %v1266_v4 = vmul.f32 %v1691_v20, %v1254_v44 }
 0x651   :  { %v1265_v46 = vmul.f32 %v1258_v24, %v2347_v36  ;;  %v1263_v51 = vmul.f32 0.5, %v1262_v49 }
 0x653   :  { %v2389_v47 = vadd.f32 %v1266_v4, %v1265_v46 }
 0x655   :  { %1694 = vtanh.f32 %v2389_v47 }
 0x65f   :  { %v1695_v16 = vpop.eup %1694 }
 0x660   :  { %v1269_v52 = vmul.f32 %v1695_v16, %v1263_v51 }
 0x662   :  { %1273 = vst [vmem:[#allocation13 + $0x28] sm:$0xff] %v1269_v52  ;;  %v1282_v53 = vpack.c.bf16 %v1269_v52, %v1269_v52 }
 0x664   :  { %1348 = vmatmul.mubr.bf16.vlgmr.msra.gmra.mrb[40].mxu0 %v1282_v53  ;;  %1389 = vmatmul.mubr.bf16.vlgmr.msra.gmra.mrb[40].mxu1 %v1282_v53 }
 0x665   :  { %1466 = vmatpush1.bf16.msra.mxu0 %v2250_v27  ;;  %1507 = vmatpush1.bf16.msra.mxu1 %v2252_v28  ;;  %v2494_v28 = vld [vmem:[#allocation37_spill] sm:$0xff] }
 0x666   :  { %1467 = vmatprep.subr.bf16.mxu0 %v2256_v29  ;;  %1508 = vmatprep.subr.bf16.mxu1 %v2258_v30  ;;  %v2495_v30 = vld [vmem:[#allocation38_spill] sm:$0xff] }
 0x667   :  { %1497 = vmatprep.mubr.bf16.mxu0 %v2479_v1  ;;  %1538 = vmatprep.mubr.bf16.mxu1 %v2479_v1 }
 0x669   :  { %1468 = vmatpush1.bf16.msra.mxu0 %v2262_v31  ;;  %1509 = vmatpush1.bf16.msra.mxu1 %v2264_v32 }
 0x66a   :  { %1469 = vmatprep.subr.bf16.mxu0 %v2268_v33  ;;  %1510 = vmatprep.subr.bf16.mxu1 %v2270_v35  ;;  %v2496_v35 = vld [vmem:[#allocation39_spill] sm:$0xff] }
 0x66d   :  { %1470 = vmatpush1.bf16.msra.mxu0 %v2274_v37  ;;  %1511 = vmatpush1.bf16.msra.mxu1 %v2276_v38  ;;  %v2497_v38 = vld [vmem:[#allocation40_spill] sm:$0xff] }
 0x66e   :  { %1471 = vmatprep.subr.bf16.mxu0 %v2280_v55  ;;  %1512 = vmatprep.subr.bf16.mxu1 %v2282_v61 }
 0x671   :  { %1472 = vmatpush1.bf16.msra.mxu0 %v2286_v39  ;;  %1513 = vmatpush1.bf16.msra.mxu1 %v2288_v5 }
 0x672   :  { %1473 = vmatprep.subr.bf16.mxu0 %v2292_v0  ;;  %1514 = vmatprep.subr.bf16.mxu1 %v2294_v18 }
 0x675   :  { %1474 = vmatpush1.bf16.msra.mxu0 %v2298_v45  ;;  %1515 = vmatpush1.bf16.msra.mxu1 %v2300_v21 }
 0x676   :  { %1475 = vmatprep.subr.bf16.mxu0 %v2304_v50  ;;  %1516 = vmatprep.subr.bf16.mxu1 %v2306_v34 }
 0x679   :  { %1476 = vmatpush1.bf16.msra.mxu0 %v2310_v10  ;;  %1517 = vmatpush1.bf16.msra.mxu1 %v2312_v22 }
 0x67a   :  { %1477 = vmatprep.subr.bf16.mxu0 %v2316_v56  ;;  %1518 = vmatprep.subr.bf16.mxu1 %v2318_v23 }
 0x67d   :  { %1478 = vmatpush1.bf16.msra.mxu0 %v2322_v12  ;;  %1519 = vmatpush1.bf16.msra.mxu1 %v2324_v19 }
 0x67e   :  { %1479 = vmatprep.subr.bf16.mxu0 %v2328_v40  ;;  %1520 = vmatprep.subr.bf16.mxu1 %v2330_v41 }
 0x681   :  { %1480 = vmatpush1.bf16.msra.mxu0 %v2334_v42  ;;  %1521 = vmatpush1.bf16.msra.mxu1 %v2336_v43 }
 0x737   :  { %v1349_v1 = vpop.f32.mrb[40].mxu0  ;;  %v1390_v27 = vpop.f32.mrb[40].mxu1 }
 0x738   :  { %v1397_v29 = vadd.f32 %v1349_v1, %v2494_v28  ;;  %v1399_v31 = vadd.f32 %v1390_v27, %v2495_v30  ;;  %v1351_v32 = vpop.f32.mrb[41].mxu0  ;;  %v1392_v33 = vpop.f32.mrb[41].mxu1 }
 0x739   :  { %v1398_v37 = vadd.f32 %v1351_v32, %v2496_v35  ;;  %v1400_v55 = vadd.f32 %v1392_v33, %v2497_v38  ;;  %v1353_v61 = vpop.f32.mrb[42].mxu0  ;;  %v1394_v39 = vpop.f32.mrb[42].mxu1 }
 0x73a   :  { %v1401_v5 = vmul.f32 0.5, %v1397_v29  ;;  %v1354_v0 = vpop.f32.mrb[43].mxu0  ;;  %v1395_v18 = vpop.f32.mrb[43].mxu1 }
 0x73b   :  { %v1405_v45 = vmul.f32 0.5, %v1398_v37  ;;  %v1410_v21 = vmul.f32 0.5, %v1400_v55 }
 0x73c   :  { %1696 = vtanh.f32 %v1401_v5 }
 0x73d   :  { %1698 = vtanh.f32 %v1405_v45 }
 0x73e   :  { %1700 = vtanh.f32 %v1399_v31 }
 0x73f   :  { %1702 = vtanh.f32 %v1410_v21 }
 0x746   :  { %v1697_v50 = vpop.eup %1696 }
 0x747   :  { %v1699_v34 = vpop.eup %1698  ;;  %v1403_v10 = vadd.f32 1.0, %v1697_v50 }
 0x748   :  { %v1407_v22 = vadd.f32 1.0, %v1699_v34  ;;  %v1701_v23 = vpop.eup %1700 }
 0x749   :  { %v1404_v56 = vmul.f32 0.5, %v1403_v10  ;;  %v1703_v42 = vpop.eup %1702 }
 0x74a   :  { %v1408_v12 = vmul.f32 0.5, %v1407_v22  ;;  %v1412_v43 = vadd.f32 1.0, %v1703_v42 }
 0x74b   :  { %v1416_v19 = vmul.f32 %v1701_v23, %v1404_v56 }
 0x74c   :  { %v1415_v40 = vmul.f32 %v1408_v12, %v2389_v47  ;;  %v1413_v36 = vmul.f32 0.5, %v1412_v43 }
 0x74e   :  { %v1417_v41 = vadd.f32 %v1416_v19, %v1415_v40 }
 0x750   :  { %1704 = vtanh.f32 %v1417_v41 }
 0x75a   :  { %v1705_v54 = vpop.eup %1704 }
 0x75b   :  { %v1419_v57 = vmul.f32 %v1705_v54, %v1413_v36 }
 0x75d   :  { %1423 = vst [vmem:[#allocation13 + $0x30] sm:$0xff] %v1419_v57  ;;  %v1432_v58 = vpack.c.bf16 %v1419_v57, %v1419_v57 }
 0x75f   :  { %1498 = vmatmul.mubr.bf16.vlgmr.msra.gmra.mrb[44].mxu0 %v1432_v58  ;;  %1539 = vmatmul.mubr.bf16.vlgmr.msra.gmra.mrb[44].mxu1 %v1432_v58 }
 0x832   :  { %v1499_v59 = vpop.f32.mrb[44].mxu0  ;;  %v1540_v60 = vpop.f32.mrb[44].mxu1 }
 0x833   :  { %v1547_v63 = vadd.f32 %v1499_v59, %v2498_v62  ;;  %v1549_v3 = vadd.f32 %v1540_v60, %v2499_v2  ;;  %v1501_v6 = vpop.f32.mrb[45].mxu0  ;;  %v1542_v7 = vpop.f32.mrb[45].mxu1 }
 0x834   :  { %v1548_v9 = vadd.f32 %v1501_v6, %v2500_v8  ;;  %v1550_v26 = vadd.f32 %v1542_v7, %v2501_v11  ;;  %v1503_v25 = vpop.f32.mrb[46].mxu0  ;;  %v1544_v13 = vpop.f32.mrb[46].mxu1 }
 0x835   :  { %v1551_v14 = vmul.f32 0.5, %v1547_v63  ;;  %v1504_v15 = vpop.f32.mrb[47].mxu0  ;;  %v1545_v17 = vpop.f32.mrb[47].mxu1 }
 0x836   :  { %v1555_v44 = vmul.f32 0.5, %v1548_v9  ;;  %v1560_v20 = vmul.f32 0.5, %v1550_v26 }
 0x837   :  { %1706 = vtanh.f32 %v1551_v14 }
 0x838   :  { %1708 = vtanh.f32 %v1555_v44 }
 0x839   :  { %1710 = vtanh.f32 %v1549_v3 }
 0x83a   :  { %1712 = vtanh.f32 %v1560_v20 }
 0x841   :  { %v1707_v24 = vpop.eup %1706 }
 0x842   :  { %v1709_v4 = vpop.eup %1708  ;;  %v1553_v46 = vadd.f32 1.0, %v1707_v24 }
 0x843   :  { %v1557_v47 = vadd.f32 1.0, %v1709_v4  ;;  %v1711_v49 = vpop.eup %1710 }
 0x844   :  { %v1554_v48 = vmul.f32 0.5, %v1553_v46  ;;  %v1713_v1 = vpop.eup %1712 }
 0x845   :  { %v1558_v51 = vmul.f32 0.5, %v1557_v47  ;;  %v1562_v27 = vadd.f32 1.0, %v1713_v1 }
 0x846   :  { %v1566_v16 = vmul.f32 %v1711_v49, %v1554_v48 }
 0x847   :  { %v1565_v52 = vmul.f32 %v1558_v51, %v1417_v41  ;;  %v1563_v28 = vmul.f32 0.5, %v1562_v27 }
 0x849   :  { %v1567_v53 = vadd.f32 %v1566_v16, %v1565_v52 }
 0x84b   :  { %1714 = vtanh.f32 %v1567_v53 }
 0x855   :  { %v1715_v29 = vpop.eup %1714 }
 0x856   :  { %v1569_v30 = vmul.f32 %v1715_v29, %v1563_v28 }
 0x858   :  { %1573 = vst [vmem:[#allocation13 + $0x38] sm:$0xff] %v1569_v30 }
 0x859   :  { %1771 = shalt.err (!%p1768_p6)
}
 0x85a   :  { %s1772_s24 = scalar_lea.hbm %s2454_s6, 1024 }
 0x85b   :  { %p1773_p7 = scmp.ne.s32.totalorder %s2454_s6, %s1772_s24  ;;  %p1776_p8 = scmp.lt.u32.totalorder %s1772_s24, %s2454_s6 }
 0x85d   :  { %p1778_p9 = pnand %p1776_p8, %p1773_p7 }
 0x85f   :  { %1781 = shalt.err (!%p1778_p9)
}
 0x860   :  { %1585 = dma.vmem_to_hbm [thread:$0]  %s1580_s4, 1024, %s2454_s6, [#allocation10], %s1793_s7, %s1793_s7, %s1794_s8  }
 0x861   :  { %1790 = dma.done.wait [#allocation10], 1024  }
 0x862   :  { %1791 = vsyncadd [#allocation10], 4294966272 }
 0x863   :  { %1589 = vsyncpa [#allocation9], 1 }
 0x864   :  { %1590 = vsyncpa [#allocation12], 1 }
 0x865   :  { %1591 = vsyncpa [#allocation10], 1 }
 0x866   :  { %1592 = vsyncmov [#allocation7] }
 0x869   :  { %s1593_s3 = vpop.sfrf %1592 }
 0x86a   :  { %p1616_p10 = scmp.ne.s32.totalorder %s1593_s3, 0 }
 0x86c   :  { %1597 = shalt.err (%p1616_p10)  }
 0x86d   :  { %1599 = vsyncmov [#allocation7 + $0x1] }
 0x870   :  { %s1600_s9 = vpop.sfrf %1599 }
 0x871   :  { %p1617_p11 = scmp.ne.s32.totalorder %s1600_s9, 0 }
 0x873   :  { %1604 = shalt.err (%p1617_p11)  }

</bundles_post_ra>
